<compile_context>
chip_gen: v6e
topology: v6e:2x2x1
jax: 0.10.0
libtpu: 0.0.40
codegen_flags: <defaults>
</compile_context>

<pallas_src>
import jax
import jax.numpy as jnp
from jax import lax
from jax.experimental import pallas as pl
from jax.experimental.pallas import tpu as pltpu


def context_rnn_kernel(ids_ref, mask_ref, wx_ref, wh_ref, wp_ref, out_ref):
    SB, M = ids_ref.shape                 # S*Bp, memory width
    NROWS, H = out_ref.shape              # (S+1)*Bp, hidden
    Bp = NROWS - SB
    S = SB // Bp
    Vp1 = wx_ref.shape[0]                 # V + 1 (last row = input-side bias)
    H3 = 3 * H

    # ---- embedding-bag + input-side gates, fused into ONE matmul -------------
    # counts_aug[n, v] = #{m : ids[n, m] == v};  counts_aug[n, V] = 1 (bias column)
    # TODO(synk): for large vocab replace the VMEM-resident counts matmul with a
    # scalar-prefetch / manual-DMA row gather (v7x has only 64 MiB physical VMEM).
    ids = ids_ref[...]                                            # (SB, M) int32
    iota = lax.broadcasted_iota(jnp.int32, (SB, Vp1), 1)          # hoisted once
    counts = (iota == (Vp1 - 1)).astype(jnp.float32)              # bias column
    for m in range(M):                                            # M tiny & static
        counts = counts + (ids[:, m:m + 1] == iota).astype(jnp.float32)
    # xg[:, 0:3H] = forward gate pre-acts (r,z,n); xg[:, 3H:6H] = backward.
    xg = jnp.dot(counts, wx_ref[...], preferred_element_type=jnp.float32)

    mask = mask_ref[...]                                          # (NROWS, 1)
    wh = wh_ref[0:H, :]                                           # (H, 6H)
    bh = wh_ref[H:H + 1, :]                                       # (1, 6H)

    # ---- interleaved bidirectional GRU recurrence -----------------------------
    h = jnp.zeros((2 * Bp, H), jnp.float32)                       # rows [h_f ; h_b]
    ys_f = [None] * S
    ys_b = [None] * S
    for k in range(S):                                            # static unrolled
        tf, tb = k, S - 1 - k
        hg = jnp.dot(h, wh, preferred_element_type=jnp.float32) + bh     # (2Bp, 6H)
        # forward cell at t = tf
        xf = xg[tf * Bp:(tf + 1) * Bp, 0:H3]
        gf = hg[0:Bp, 0:H3]
        rf = jax.nn.sigmoid(xf[:, 0:H] + gf[:, 0:H])
        zf = jax.nn.sigmoid(xf[:, H:2 * H] + gf[:, H:2 * H])
        nf = jnp.tanh(xf[:, 2 * H:H3] + rf * gf[:, 2 * H:H3])
        hf_new = (1.0 - zf) * nf + zf * h[0:Bp]
        # backward cell at t = tb
        xb = xg[tb * Bp:(tb + 1) * Bp, H3:2 * H3]
        gb = hg[Bp:2 * Bp, H3:2 * H3]
        rb = jax.nn.sigmoid(xb[:, 0:H] + gb[:, 0:H])
        zb = jax.nn.sigmoid(xb[:, H:2 * H] + gb[:, H:2 * H])
        nb = jnp.tanh(xb[:, 2 * H:H3] + rb * gb[:, 2 * H:H3])
        hb_new = (1.0 - zb) * nb + zb * h[Bp:2 * Bp]
        ys_f[tf] = hf_new                                         # zeroed later via mask
        ys_b[tb] = hb_new
        mf = mask[tf * Bp:(tf + 1) * Bp]                          # (Bp, 1)
        mb = mask[tb * Bp:(tb + 1) * Bp]
        h = jnp.concatenate(
            [mf * hf_new + (1.0 - mf) * h[0:Bp],                  # freeze past length
             mb * hb_new + (1.0 - mb) * h[Bp:2 * Bp]], axis=0)

    # ---- stacked projection: [outputs ; final hidden] -> one matmul, one store
    rows = [jnp.concatenate([ys_f[t], ys_b[t]], axis=1) for t in range(S)]
    rows.append(jnp.concatenate([h[0:Bp], h[Bp:2 * Bp]], axis=1))
    y = jnp.concatenate(rows, axis=0) * mask                      # (NROWS, 2H)
    wp = wp_ref[0:2 * H, :]
    bp = wp_ref[2 * H:2 * H + 1, :]
    out_ref[...] = jnp.dot(y, wp, preferred_element_type=jnp.float32) + bp


def context_rnn_forward(input_seqs, input_lengths, params):
    """JAX/Pallas equivalent of ContextRNN.forward (eval mode).

    input_seqs:    (B, S, M) int32 token ids
    input_lengths: (B,)      int32 valid lengths (sorted descending, like PyTorch)
    params:        dict of weights in PyTorch layouts
    returns:       (outputs (B, S, H), hidden (1, B, H))
    """
    B, S, M = input_seqs.shape
    V, H = params["emb"].shape
    Bp = max(8, -(-B // 8) * 8)            # pad batch to the 8-sublane tile
    SB = S * Bp

    # ---- layout plumbing & one-time weight-slab fusion (wrapper-side) --------
    ids = jnp.pad(input_seqs.astype(jnp.int32), ((0, Bp - B), (0, 0), (0, 0)))
    ids_sb = jnp.transpose(ids, (1, 0, 2)).reshape(SB, M)        # row n = t*Bp + b

    lens = jnp.pad(input_lengths.astype(jnp.int32), (0, Bp - B))            # pad -> 0
    mask_tb = (jnp.arange(S)[:, None] < lens[None, :]).astype(jnp.float32)  # (S, Bp)
    mask = jnp.concatenate([mask_tb.reshape(SB, 1),
                            jnp.ones((Bp, 1), jnp.float32)], axis=0)        # hidden rows = 1

    # TODO(synk): nn.Dropout(dropout) on the embedded sum is eval-mode identity here.
    wih = jnp.concatenate([params["wih_f"].T, params["wih_b"].T], axis=1)   # (H, 6H)
    bih = jnp.concatenate([params["bih_f"], params["bih_b"]])[None, :]      # (1, 6H)
    wx_aug = jnp.concatenate([params["emb"] @ wih, bih], axis=0)            # (V+1, 6H)

    whh = jnp.concatenate([params["whh_f"].T, params["whh_b"].T], axis=1)   # (H, 6H)
    bhh = jnp.concatenate([params["bhh_f"], params["bhh_b"]])[None, :]      # (1, 6H)
    wh_slab = jnp.concatenate([whh, bhh], axis=0)                           # (H+1, 6H)

    wp_slab = jnp.concatenate([params["wp"].T, params["bp"][None, :]], axis=0)  # (2H+1, H)

    vmem = pl.BlockSpec(memory_space=pltpu.MemorySpace.VMEM)
    proj = pl.pallas_call(
        context_rnn_kernel,
        out_shape=jax.ShapeDtypeStruct(((S + 1) * Bp, H), jnp.float32),
        in_specs=[vmem] * 5,
        out_specs=vmem,
    )(ids_sb, mask, wx_aug, wh_slab, wp_slab)

    outputs = jnp.transpose(proj[:SB].reshape(S, Bp, H)[:, :B], (1, 0, 2))  # (B, S, H)
    hidden = proj[SB:SB + B][None]                                          # (1, B, H)
    return outputs, hidden


def context_rnn_reference(input_seqs, input_lengths, params):
    """Pure-JAX reference with identical semantics (for verification)."""
    B, S, M = input_seqs.shape
    V, H = params["emb"].shape
    emb = jnp.take(params["emb"], input_seqs.reshape(B, S * M), axis=0)
    emb = emb.reshape(B, S, M, H).sum(axis=2)                     # (B, S, H)
    x = jnp.transpose(emb, (1, 0, 2))                             # (S, B, H)

    def direction(wih, whh, bih, bhh, reverse):
        h = jnp.zeros((B, H), jnp.float32)
        ys = [None] * S
        order = range(S - 1, -1, -1) if reverse else range(S)
        for t in order:
            active = (input_lengths > t)[:, None]
            xg = x[t] @ wih.T + bih
            hg = h @ whh.T + bhh
            r = jax.nn.sigmoid(xg[:, :H] + hg[:, :H])
            z = jax.nn.sigmoid(xg[:, H:2 * H] + hg[:, H:2 * H])
            n = jnp.tanh(xg[:, 2 * H:] + r * hg[:, 2 * H:])
            h_new = (1.0 - z) * n + z * h
            ys[t] = jnp.where(active, h_new, 0.0)
            h = jnp.where(active, h_new, h)
        return jnp.stack(ys, axis=0), h

    yf, hf = direction(params["wih_f"], params["whh_f"], params["bih_f"], params["bhh_f"], False)
    yb, hb = direction(params["wih_b"], params["whh_b"], params["bih_b"], params["bhh_b"], True)
    out = jnp.concatenate([yf, yb], axis=-1) @ params["wp"].T + params["bp"]
    hid = jnp.concatenate([hf, hb], axis=-1) @ params["wp"].T + params["bp"]
    return jnp.transpose(out, (1, 0, 2)), hid[None]


if __name__ == "__main__":
    # input_size (vocab) = 64, hidden_size = 32, batch = 2, seq = 8, memory width = 4
    V, H = 64, 32
    B, S, M = 2, 8, 4

    key = jax.random.PRNGKey(0)
    ks = jax.random.split(key, 12)

    def uni(k, shape, bound):
        return jax.random.uniform(k, shape, jnp.float32, -bound, bound)

    gb = 1.0 / (H ** 0.5)          # nn.GRU default init bound
    lb = 1.0 / ((2 * H) ** 0.5)    # nn.Linear(2H, H) init bound
    params = {
        "emb":   0.5 * jax.random.normal(ks[0], (V, H), jnp.float32),
        "wih_f": uni(ks[1], (3 * H, H), gb), "whh_f": uni(ks[2], (3 * H, H), gb),
        "bih_f": uni(ks[3], (3 * H,), gb),   "bhh_f": uni(ks[4], (3 * H,), gb),
        "wih_b": uni(ks[5], (3 * H, H), gb), "whh_b": uni(ks[6], (3 * H, H), gb),
        "bih_b": uni(ks[7], (3 * H,), gb),   "bhh_b": uni(ks[8], (3 * H,), gb),
        "wp":    uni(ks[9], (H, 2 * H), lb), "bp":    uni(ks[10], (H,), lb),
    }

    input_seqs = jax.random.randint(ks[11], (B, S, M), 0, V, dtype=jnp.int32)
    input_lengths = jnp.array([S, S - 3], dtype=jnp.int32)  # sorted desc, like pack_padded_sequence

    outputs, hidden = context_rnn_forward(input_seqs, input_lengths, params)
    outputs = jax.block_until_ready(outputs)
    hidden = jax.block_until_ready(hidden)

    ref_out, ref_hid = context_rnn_reference(input_seqs, input_lengths, params)
    assert outputs.shape == (B, S, H)
    assert hidden.shape == (1, B, H)
    assert jnp.allclose(outputs, ref_out, atol=5e-2, rtol=5e-2)
    assert jnp.allclose(hidden, ref_hid, atol=5e-2, rtol=5e-2)

    print("KERNEL_OK")
</pallas_src>

<mosaic_0001>
module attributes {stable_mosaic.version = 11 : i64} {
  func.func @context_rnn_kernel(%arg0: memref<64x4xi32, #tpu.memory_space<vmem>>, %arg1: memref<72x1xf32, #tpu.memory_space<vmem>>, %arg2: memref<65x192xf32, #tpu.memory_space<vmem>>, %arg3: memref<33x192xf32, #tpu.memory_space<vmem>>, %arg4: memref<65x32xf32, #tpu.memory_space<vmem>>, %arg5: memref<72x32xf32, #tpu.memory_space<vmem>>) attributes {dimension_semantics = [], scalar_prefetch = 0 : i64, scratch_operands = 0 : i64, tpu.core_type = #tpu.core_type<tc>} {
    %c0 = arith.constant 0 : index
    %c0_0 = arith.constant 0 : index
    %0 = vector.load %arg0[%c0, %c0_0] : memref<64x4xi32, #tpu.memory_space<vmem>>, vector<64x4xi32>
    %1 = tpu.iota {dimensions = array<i32: 1>} : vector<64x65xi32>
    %c64_i32 = arith.constant 64 : i32
    %2 = vector.broadcast %c64_i32 : i32 to vector<64x65xi32>
    %3 = arith.cmpi eq, %1, %2 : vector<64x65xi32>
    %4 = arith.extui %3 : vector<64x65xi1> to vector<64x65xi32>
    %5 = arith.sitofp %4 : vector<64x65xi32> to vector<64x65xf32>
    %6 = vector.extract_strided_slice %0 {offsets = [0, 0], sizes = [64, 1], strides = [1, 1]} : vector<64x4xi32> to vector<64x1xi32>
    %7 = vector.broadcast %6 : vector<64x1xi32> to vector<64x65xi32>
    %8 = arith.cmpi eq, %7, %1 : vector<64x65xi32>
    %9 = arith.extui %8 : vector<64x65xi1> to vector<64x65xi32>
    %10 = arith.sitofp %9 : vector<64x65xi32> to vector<64x65xf32>
    %11 = arith.addf %5, %10 : vector<64x65xf32>
    %12 = vector.extract_strided_slice %0 {offsets = [0, 1], sizes = [64, 1], strides = [1, 1]} : vector<64x4xi32> to vector<64x1xi32>
    %13 = vector.broadcast %12 : vector<64x1xi32> to vector<64x65xi32>
    %14 = arith.cmpi eq, %13, %1 : vector<64x65xi32>
    %15 = arith.extui %14 : vector<64x65xi1> to vector<64x65xi32>
    %16 = arith.sitofp %15 : vector<64x65xi32> to vector<64x65xf32>
    %17 = arith.addf %11, %16 : vector<64x65xf32>
    %18 = vector.extract_strided_slice %0 {offsets = [0, 2], sizes = [64, 1], strides = [1, 1]} : vector<64x4xi32> to vector<64x1xi32>
    %19 = vector.broadcast %18 : vector<64x1xi32> to vector<64x65xi32>
    %20 = arith.cmpi eq, %19, %1 : vector<64x65xi32>
    %21 = arith.extui %20 : vector<64x65xi1> to vector<64x65xi32>
    %22 = arith.sitofp %21 : vector<64x65xi32> to vector<64x65xf32>
    %23 = arith.addf %17, %22 : vector<64x65xf32>
    %24 = vector.extract_strided_slice %0 {offsets = [0, 3], sizes = [64, 1], strides = [1, 1]} : vector<64x4xi32> to vector<64x1xi32>
    %25 = vector.broadcast %24 : vector<64x1xi32> to vector<64x65xi32>
    %26 = arith.cmpi eq, %25, %1 : vector<64x65xi32>
    %27 = arith.extui %26 : vector<64x65xi1> to vector<64x65xi32>
    %28 = arith.sitofp %27 : vector<64x65xi32> to vector<64x65xf32>
    %29 = arith.addf %23, %28 : vector<64x65xf32>
    %c0_1 = arith.constant 0 : index
    %c0_2 = arith.constant 0 : index
    %30 = vector.load %arg2[%c0_1, %c0_2] : memref<65x192xf32, #tpu.memory_space<vmem>>, vector<65x192xf32>
    %cst = arith.constant dense<0.000000e+00> : vector<64x192xf32>
    %31 = tpu.matmul %29, %30, %cst {dimension_numbers = #tpu.dot_dimension_numbers<[1], [0], [0], [1], [0, 0, 1, 1], [], []>} : vector<64x65xf32>, vector<65x192xf32>, vector<64x192xf32> -> vector<64x192xf32>
    %c0_3 = arith.constant 0 : index
    %c0_4 = arith.constant 0 : index
    %32 = vector.load %arg1[%c0_3, %c0_4] : memref<72x1xf32, #tpu.memory_space<vmem>>, vector<72x1xf32>
    %c0_5 = arith.constant 0 : index
    %c0_6 = arith.constant 0 : index
    %33 = vector.load %arg3[%c0_5, %c0_6] : memref<33x192xf32, #tpu.memory_space<vmem>>, vector<32x192xf32>
    %c32 = arith.constant 32 : index
    %c0_7 = arith.constant 0 : index
    %34 = vector.load %arg3[%c32, %c0_7] : memref<33x192xf32, #tpu.memory_space<vmem>>, vector<1x192xf32>
    %cst_8 = arith.constant 0.000000e+00 : f32
    %35 = vector.broadcast %cst_8 : f32 to vector<16x32xf32>
    %cst_9 = arith.constant dense<0.000000e+00> : vector<16x192xf32>
    %36 = tpu.matmul %35, %33, %cst_9 {dimension_numbers = #tpu.dot_dimension_numbers<[1], [0], [0], [1], [0, 0, 1, 1], [], []>} : vector<16x32xf32>, vector<32x192xf32>, vector<16x192xf32> -> vector<16x192xf32>
    %37 = vector.broadcast %34 : vector<1x192xf32> to vector<16x192xf32>
    %38 = arith.addf %36, %37 : vector<16x192xf32>
    %39 = vector.extract_strided_slice %31 {offsets = [0, 0], sizes = [8, 96], strides = [1, 1]} : vector<64x192xf32> to vector<8x96xf32>
    %40 = vector.extract_strided_slice %38 {offsets = [0, 0], sizes = [8, 96], strides = [1, 1]} : vector<16x192xf32> to vector<8x96xf32>
    %41 = vector.extract_strided_slice %39 {offsets = [0, 0], sizes = [8, 32], strides = [1, 1]} : vector<8x96xf32> to vector<8x32xf32>
    %42 = vector.extract_strided_slice %40 {offsets = [0, 0], sizes = [8, 32], strides = [1, 1]} : vector<8x96xf32> to vector<8x32xf32>
    %43 = arith.addf %41, %42 : vector<8x32xf32>
    %44 = arith.negf %43 : vector<8x32xf32>
    %45 = math.exp %44 : vector<8x32xf32>
    %cst_10 = arith.constant 1.000000e+00 : f32
    %46 = vector.broadcast %cst_10 : f32 to vector<8x32xf32>
    %47 = arith.addf %46, %45 : vector<8x32xf32>
    %48 = arith.divf %46, %47 : vector<8x32xf32>
    %49 = vector.extract_strided_slice %39 {offsets = [0, 32], sizes = [8, 32], strides = [1, 1]} : vector<8x96xf32> to vector<8x32xf32>
    %50 = vector.extract_strided_slice %40 {offsets = [0, 32], sizes = [8, 32], strides = [1, 1]} : vector<8x96xf32> to vector<8x32xf32>
    %51 = arith.addf %49, %50 : vector<8x32xf32>
    %52 = arith.negf %51 : vector<8x32xf32>
    %53 = math.exp %52 : vector<8x32xf32>
    %cst_11 = arith.constant 1.000000e+00 : f32
    %54 = vector.broadcast %cst_11 : f32 to vector<8x32xf32>
    %55 = arith.addf %54, %53 : vector<8x32xf32>
    %56 = arith.divf %54, %55 : vector<8x32xf32>
    %57 = vector.extract_strided_slice %39 {offsets = [0, 64], sizes = [8, 32], strides = [1, 1]} : vector<8x96xf32> to vector<8x32xf32>
    %58 = vector.extract_strided_slice %40 {offsets = [0, 64], sizes = [8, 32], strides = [1, 1]} : vector<8x96xf32> to vector<8x32xf32>
    %59 = arith.mulf %48, %58 : vector<8x32xf32>
    %60 = arith.addf %57, %59 : vector<8x32xf32>
    %61 = math.tanh %60 : vector<8x32xf32>
    %cst_12 = arith.constant 1.000000e+00 : f32
    %62 = vector.broadcast %cst_12 : f32 to vector<8x32xf32>
    %63 = arith.subf %62, %56 : vector<8x32xf32>
    %64 = arith.mulf %63, %61 : vector<8x32xf32>
    %65 = vector.extract_strided_slice %35 {offsets = [0, 0], sizes = [8, 32], strides = [1, 1]} : vector<16x32xf32> to vector<8x32xf32>
    %66 = arith.mulf %56, %65 : vector<8x32xf32>
    %67 = arith.addf %64, %66 : vector<8x32xf32>
    %68 = vector.extract_strided_slice %31 {offsets = [56, 96], sizes = [8, 96], strides = [1, 1]} : vector<64x192xf32> to vector<8x96xf32>
    %69 = vector.extract_strided_slice %38 {offsets = [8, 96], sizes = [8, 96], strides = [1, 1]} : vector<16x192xf32> to vector<8x96xf32>
    %70 = vector.extract_strided_slice %68 {offsets = [0, 0], sizes = [8, 32], strides = [1, 1]} : vector<8x96xf32> to vector<8x32xf32>
    %71 = vector.extract_strided_slice %69 {offsets = [0, 0], sizes = [8, 32], strides = [1, 1]} : vector<8x96xf32> to vector<8x32xf32>
    %72 = arith.addf %70, %71 : vector<8x32xf32>
    %73 = arith.negf %72 : vector<8x32xf32>
    %74 = math.exp %73 : vector<8x32xf32>
    %cst_13 = arith.constant 1.000000e+00 : f32
    %75 = vector.broadcast %cst_13 : f32 to vector<8x32xf32>
    %76 = arith.addf %75, %74 : vector<8x32xf32>
    %77 = arith.divf %75, %76 : vector<8x32xf32>
    %78 = vector.extract_strided_slice %68 {offsets = [0, 32], sizes = [8, 32], strides = [1, 1]} : vector<8x96xf32> to vector<8x32xf32>
    %79 = vector.extract_strided_slice %69 {offsets = [0, 32], sizes = [8, 32], strides = [1, 1]} : vector<8x96xf32> to vector<8x32xf32>
    %80 = arith.addf %78, %79 : vector<8x32xf32>
    %81 = arith.negf %80 : vector<8x32xf32>
    %82 = math.exp %81 : vector<8x32xf32>
    %cst_14 = arith.constant 1.000000e+00 : f32
    %83 = vector.broadcast %cst_14 : f32 to vector<8x32xf32>
    %84 = arith.addf %83, %82 : vector<8x32xf32>
    %85 = arith.divf %83, %84 : vector<8x32xf32>
    %86 = vector.extract_strided_slice %68 {offsets = [0, 64], sizes = [8, 32], strides = [1, 1]} : vector<8x96xf32> to vector<8x32xf32>
    %87 = vector.extract_strided_slice %69 {offsets = [0, 64], sizes = [8, 32], strides = [1, 1]} : vector<8x96xf32> to vector<8x32xf32>
    %88 = arith.mulf %77, %87 : vector<8x32xf32>
    %89 = arith.addf %86, %88 : vector<8x32xf32>
    %90 = math.tanh %89 : vector<8x32xf32>
    %cst_15 = arith.constant 1.000000e+00 : f32
    %91 = vector.broadcast %cst_15 : f32 to vector<8x32xf32>
    %92 = arith.subf %91, %85 : vector<8x32xf32>
    %93 = arith.mulf %92, %90 : vector<8x32xf32>
    %94 = vector.extract_strided_slice %35 {offsets = [8, 0], sizes = [8, 32], strides = [1, 1]} : vector<16x32xf32> to vector<8x32xf32>
    %95 = arith.mulf %85, %94 : vector<8x32xf32>
    %96 = arith.addf %93, %95 : vector<8x32xf32>
    %97 = vector.extract_strided_slice %32 {offsets = [0, 0], sizes = [8, 1], strides = [1, 1]} : vector<72x1xf32> to vector<8x1xf32>
    %98 = vector.extract_strided_slice %32 {offsets = [56, 0], sizes = [8, 1], strides = [1, 1]} : vector<72x1xf32> to vector<8x1xf32>
    %99 = vector.broadcast %97 : vector<8x1xf32> to vector<8x32xf32>
    %100 = arith.mulf %99, %67 : vector<8x32xf32>
    %cst_16 = arith.constant 1.000000e+00 : f32
    %101 = vector.broadcast %cst_16 : f32 to vector<8x1xf32>
    %102 = arith.subf %101, %97 : vector<8x1xf32>
    %103 = vector.extract_strided_slice %35 {offsets = [0, 0], sizes = [8, 32], strides = [1, 1]} : vector<16x32xf32> to vector<8x32xf32>
    %104 = vector.broadcast %102 : vector<8x1xf32> to vector<8x32xf32>
    %105 = arith.mulf %104, %103 : vector<8x32xf32>
    %106 = arith.addf %100, %105 : vector<8x32xf32>
    %107 = vector.broadcast %98 : vector<8x1xf32> to vector<8x32xf32>
    %108 = arith.mulf %107, %96 : vector<8x32xf32>
    %cst_17 = arith.constant 1.000000e+00 : f32
    %109 = vector.broadcast %cst_17 : f32 to vector<8x1xf32>
    %110 = arith.subf %109, %98 : vector<8x1xf32>
    %111 = vector.extract_strided_slice %35 {offsets = [8, 0], sizes = [8, 32], strides = [1, 1]} : vector<16x32xf32> to vector<8x32xf32>
    %112 = vector.broadcast %110 : vector<8x1xf32> to vector<8x32xf32>
    %113 = arith.mulf %112, %111 : vector<8x32xf32>
    %114 = arith.addf %108, %113 : vector<8x32xf32>
    %115 = tpu.concatenate %106, %114 in 0 : vector<8x32xf32>, vector<8x32xf32> -> vector<16x32xf32>
    %cst_18 = arith.constant dense<0.000000e+00> : vector<16x192xf32>
    %116 = tpu.matmul %115, %33, %cst_18 {dimension_numbers = #tpu.dot_dimension_numbers<[1], [0], [0], [1], [0, 0, 1, 1], [], []>} : vector<16x32xf32>, vector<32x192xf32>, vector<16x192xf32> -> vector<16x192xf32>
    %117 = vector.broadcast %34 : vector<1x192xf32> to vector<16x192xf32>
    %118 = arith.addf %116, %117 : vector<16x192xf32>
    %119 = vector.extract_strided_slice %31 {offsets = [8, 0], sizes = [8, 96], strides = [1, 1]} : vector<64x192xf32> to vector<8x96xf32>
    %120 = vector.extract_strided_slice %118 {offsets = [0, 0], sizes = [8, 96], strides = [1, 1]} : vector<16x192xf32> to vector<8x96xf32>
    %121 = vector.extract_strided_slice %119 {offsets = [0, 0], sizes = [8, 32], strides = [1, 1]} : vector<8x96xf32> to vector<8x32xf32>
    %122 = vector.extract_strided_slice %120 {offsets = [0, 0], sizes = [8, 32], strides = [1, 1]} : vector<8x96xf32> to vector<8x32xf32>
    %123 = arith.addf %121, %122 : vector<8x32xf32>
    %124 = arith.negf %123 : vector<8x32xf32>
    %125 = math.exp %124 : vector<8x32xf32>
    %cst_19 = arith.constant 1.000000e+00 : f32
    %126 = vector.broadcast %cst_19 : f32 to vector<8x32xf32>
    %127 = arith.addf %126, %125 : vector<8x32xf32>
    %128 = arith.divf %126, %127 : vector<8x32xf32>
    %129 = vector.extract_strided_slice %119 {offsets = [0, 32], sizes = [8, 32], strides = [1, 1]} : vector<8x96xf32> to vector<8x32xf32>
    %130 = vector.extract_strided_slice %120 {offsets = [0, 32], sizes = [8, 32], strides = [1, 1]} : vector<8x96xf32> to vector<8x32xf32>
    %131 = arith.addf %129, %130 : vector<8x32xf32>
    %132 = arith.negf %131 : vector<8x32xf32>
    %133 = math.exp %132 : vector<8x32xf32>
    %cst_20 = arith.constant 1.000000e+00 : f32
    %134 = vector.broadcast %cst_20 : f32 to vector<8x32xf32>
    %135 = arith.addf %134, %133 : vector<8x32xf32>
    %136 = arith.divf %134, %135 : vector<8x32xf32>
    %137 = vector.extract_strided_slice %119 {offsets = [0, 64], sizes = [8, 32], strides = [1, 1]} : vector<8x96xf32> to vector<8x32xf32>
    %138 = vector.extract_strided_slice %120 {offsets = [0, 64], sizes = [8, 32], strides = [1, 1]} : vector<8x96xf32> to vector<8x32xf32>
    %139 = arith.mulf %128, %138 : vector<8x32xf32>
    %140 = arith.addf %137, %139 : vector<8x32xf32>
    %141 = math.tanh %140 : vector<8x32xf32>
    %cst_21 = arith.constant 1.000000e+00 : f32
    %142 = vector.broadcast %cst_21 : f32 to vector<8x32xf32>
    %143 = arith.subf %142, %136 : vector<8x32xf32>
    %144 = arith.mulf %143, %141 : vector<8x32xf32>
    %145 = vector.extract_strided_slice %115 {offsets = [0, 0], sizes = [8, 32], strides = [1, 1]} : vector<16x32xf32> to vector<8x32xf32>
    %146 = arith.mulf %136, %145 : vector<8x32xf32>
    %147 = arith.addf %144, %146 : vector<8x32xf32>
    %148 = vector.extract_strided_slice %31 {offsets = [48, 96], sizes = [8, 96], strides = [1, 1]} : vector<64x192xf32> to vector<8x96xf32>
    %149 = vector.extract_strided_slice %118 {offsets = [8, 96], sizes = [8, 96], strides = [1, 1]} : vector<16x192xf32> to vector<8x96xf32>
    %150 = vector.extract_strided_slice %148 {offsets = [0, 0], sizes = [8, 32], strides = [1, 1]} : vector<8x96xf32> to vector<8x32xf32>
    %151 = vector.extract_strided_slice %149 {offsets = [0, 0], sizes = [8, 32], strides = [1, 1]} : vector<8x96xf32> to vector<8x32xf32>
    %152 = arith.addf %150, %151 : vector<8x32xf32>
    %153 = arith.negf %152 : vector<8x32xf32>
    %154 = math.exp %153 : vector<8x32xf32>
    %cst_22 = arith.constant 1.000000e+00 : f32
    %155 = vector.broadcast %cst_22 : f32 to vector<8x32xf32>
    %156 = arith.addf %155, %154 : vector<8x32xf32>
    %157 = arith.divf %155, %156 : vector<8x32xf32>
    %158 = vector.extract_strided_slice %148 {offsets = [0, 32], sizes = [8, 32], strides = [1, 1]} : vector<8x96xf32> to vector<8x32xf32>
    %159 = vector.extract_strided_slice %149 {offsets = [0, 32], sizes = [8, 32], strides = [1, 1]} : vector<8x96xf32> to vector<8x32xf32>
    %160 = arith.addf %158, %159 : vector<8x32xf32>
    %161 = arith.negf %160 : vector<8x32xf32>
    %162 = math.exp %161 : vector<8x32xf32>
    %cst_23 = arith.constant 1.000000e+00 : f32
    %163 = vector.broadcast %cst_23 : f32 to vector<8x32xf32>
    %164 = arith.addf %163, %162 : vector<8x32xf32>
    %165 = arith.divf %163, %164 : vector<8x32xf32>
    %166 = vector.extract_strided_slice %148 {offsets = [0, 64], sizes = [8, 32], strides = [1, 1]} : vector<8x96xf32> to vector<8x32xf32>
    %167 = vector.extract_strided_slice %149 {offsets = [0, 64], sizes = [8, 32], strides = [1, 1]} : vector<8x96xf32> to vector<8x32xf32>
    %168 = arith.mulf %157, %167 : vector<8x32xf32>
    %169 = arith.addf %166, %168 : vector<8x32xf32>
    %170 = math.tanh %169 : vector<8x32xf32>
    %cst_24 = arith.constant 1.000000e+00 : f32
    %171 = vector.broadcast %cst_24 : f32 to vector<8x32xf32>
    %172 = arith.subf %171, %165 : vector<8x32xf32>
    %173 = arith.mulf %172, %170 : vector<8x32xf32>
    %174 = vector.extract_strided_slice %115 {offsets = [8, 0], sizes = [8, 32], strides = [1, 1]} : vector<16x32xf32> to vector<8x32xf32>
    %175 = arith.mulf %165, %174 : vector<8x32xf32>
    %176 = arith.addf %173, %175 : vector<8x32xf32>
    %177 = vector.extract_strided_slice %32 {offsets = [8, 0], sizes = [8, 1], strides = [1, 1]} : vector<72x1xf32> to vector<8x1xf32>
    %178 = vector.extract_strided_slice %32 {offsets = [48, 0], sizes = [8, 1], strides = [1, 1]} : vector<72x1xf32> to vector<8x1xf32>
    %179 = vector.broadcast %177 : vector<8x1xf32> to vector<8x32xf32>
    %180 = arith.mulf %179, %147 : vector<8x32xf32>
    %cst_25 = arith.constant 1.000000e+00 : f32
    %181 = vector.broadcast %cst_25 : f32 to vector<8x1xf32>
    %182 = arith.subf %181, %177 : vector<8x1xf32>
    %183 = vector.extract_strided_slice %115 {offsets = [0, 0], sizes = [8, 32], strides = [1, 1]} : vector<16x32xf32> to vector<8x32xf32>
    %184 = vector.broadcast %182 : vector<8x1xf32> to vector<8x32xf32>
    %185 = arith.mulf %184, %183 : vector<8x32xf32>
    %186 = arith.addf %180, %185 : vector<8x32xf32>
    %187 = vector.broadcast %178 : vector<8x1xf32> to vector<8x32xf32>
    %188 = arith.mulf %187, %176 : vector<8x32xf32>
    %cst_26 = arith.constant 1.000000e+00 : f32
    %189 = vector.broadcast %cst_26 : f32 to vector<8x1xf32>
    %190 = arith.subf %189, %178 : vector<8x1xf32>
    %191 = vector.extract_strided_slice %115 {offsets = [8, 0], sizes = [8, 32], strides = [1, 1]} : vector<16x32xf32> to vector<8x32xf32>
    %192 = vector.broadcast %190 : vector<8x1xf32> to vector<8x32xf32>
    %193 = arith.mulf %192, %191 : vector<8x32xf32>
    %194 = arith.addf %188, %193 : vector<8x32xf32>
    %195 = tpu.concatenate %186, %194 in 0 : vector<8x32xf32>, vector<8x32xf32> -> vector<16x32xf32>
    %cst_27 = arith.constant dense<0.000000e+00> : vector<16x192xf32>
    %196 = tpu.matmul %195, %33, %cst_27 {dimension_numbers = #tpu.dot_dimension_numbers<[1], [0], [0], [1], [0, 0, 1, 1], [], []>} : vector<16x32xf32>, vector<32x192xf32>, vector<16x192xf32> -> vector<16x192xf32>
    %197 = vector.broadcast %34 : vector<1x192xf32> to vector<16x192xf32>
    %198 = arith.addf %196, %197 : vector<16x192xf32>
    %199 = vector.extract_strided_slice %31 {offsets = [16, 0], sizes = [8, 96], strides = [1, 1]} : vector<64x192xf32> to vector<8x96xf32>
    %200 = vector.extract_strided_slice %198 {offsets = [0, 0], sizes = [8, 96], strides = [1, 1]} : vector<16x192xf32> to vector<8x96xf32>
    %201 = vector.extract_strided_slice %199 {offsets = [0, 0], sizes = [8, 32], strides = [1, 1]} : vector<8x96xf32> to vector<8x32xf32>
    %202 = vector.extract_strided_slice %200 {offsets = [0, 0], sizes = [8, 32], strides = [1, 1]} : vector<8x96xf32> to vector<8x32xf32>
    %203 = arith.addf %201, %202 : vector<8x32xf32>
    %204 = arith.negf %203 : vector<8x32xf32>
    %205 = math.exp %204 : vector<8x32xf32>
    %cst_28 = arith.constant 1.000000e+00 : f32
    %206 = vector.broadcast %cst_28 : f32 to vector<8x32xf32>
    %207 = arith.addf %206, %205 : vector<8x32xf32>
    %208 = arith.divf %206, %207 : vector<8x32xf32>
    %209 = vector.extract_strided_slice %199 {offsets = [0, 32], sizes = [8, 32], strides = [1, 1]} : vector<8x96xf32> to vector<8x32xf32>
    %210 = vector.extract_strided_slice %200 {offsets = [0, 32], sizes = [8, 32], strides = [1, 1]} : vector<8x96xf32> to vector<8x32xf32>
    %211 = arith.addf %209, %210 : vector<8x32xf32>
    %212 = arith.negf %211 : vector<8x32xf32>
    %213 = math.exp %212 : vector<8x32xf32>
    %cst_29 = arith.constant 1.000000e+00 : f32
    %214 = vector.broadcast %cst_29 : f32 to vector<8x32xf32>
    %215 = arith.addf %214, %213 : vector<8x32xf32>
    %216 = arith.divf %214, %215 : vector<8x32xf32>
    %217 = vector.extract_strided_slice %199 {offsets = [0, 64], sizes = [8, 32], strides = [1, 1]} : vector<8x96xf32> to vector<8x32xf32>
    %218 = vector.extract_strided_slice %200 {offsets = [0, 64], sizes = [8, 32], strides = [1, 1]} : vector<8x96xf32> to vector<8x32xf32>
    %219 = arith.mulf %208, %218 : vector<8x32xf32>
    %220 = arith.addf %217, %219 : vector<8x32xf32>
    %221 = math.tanh %220 : vector<8x32xf32>
    %cst_30 = arith.constant 1.000000e+00 : f32
    %222 = vector.broadcast %cst_30 : f32 to vector<8x32xf32>
    %223 = arith.subf %222, %216 : vector<8x32xf32>
    %224 = arith.mulf %223, %221 : vector<8x32xf32>
    %225 = vector.extract_strided_slice %195 {offsets = [0, 0], sizes = [8, 32], strides = [1, 1]} : vector<16x32xf32> to vector<8x32xf32>
    %226 = arith.mulf %216, %225 : vector<8x32xf32>
    %227 = arith.addf %224, %226 : vector<8x32xf32>
    %228 = vector.extract_strided_slice %31 {offsets = [40, 96], sizes = [8, 96], strides = [1, 1]} : vector<64x192xf32> to vector<8x96xf32>
    %229 = vector.extract_strided_slice %198 {offsets = [8, 96], sizes = [8, 96], strides = [1, 1]} : vector<16x192xf32> to vector<8x96xf32>
    %230 = vector.extract_strided_slice %228 {offsets = [0, 0], sizes = [8, 32], strides = [1, 1]} : vector<8x96xf32> to vector<8x32xf32>
    %231 = vector.extract_strided_slice %229 {offsets = [0, 0], sizes = [8, 32], strides = [1, 1]} : vector<8x96xf32> to vector<8x32xf32>
    %232 = arith.addf %230, %231 : vector<8x32xf32>
    %233 = arith.negf %232 : vector<8x32xf32>
    %234 = math.exp %233 : vector<8x32xf32>
    %cst_31 = arith.constant 1.000000e+00 : f32
    %235 = vector.broadcast %cst_31 : f32 to vector<8x32xf32>
    %236 = arith.addf %235, %234 : vector<8x32xf32>
    %237 = arith.divf %235, %236 : vector<8x32xf32>
    %238 = vector.extract_strided_slice %228 {offsets = [0, 32], sizes = [8, 32], strides = [1, 1]} : vector<8x96xf32> to vector<8x32xf32>
    %239 = vector.extract_strided_slice %229 {offsets = [0, 32], sizes = [8, 32], strides = [1, 1]} : vector<8x96xf32> to vector<8x32xf32>
    %240 = arith.addf %238, %239 : vector<8x32xf32>
    %241 = arith.negf %240 : vector<8x32xf32>
    %242 = math.exp %241 : vector<8x32xf32>
    %cst_32 = arith.constant 1.000000e+00 : f32
    %243 = vector.broadcast %cst_32 : f32 to vector<8x32xf32>
    %244 = arith.addf %243, %242 : vector<8x32xf32>
    %245 = arith.divf %243, %244 : vector<8x32xf32>
    %246 = vector.extract_strided_slice %228 {offsets = [0, 64], sizes = [8, 32], strides = [1, 1]} : vector<8x96xf32> to vector<8x32xf32>
    %247 = vector.extract_strided_slice %229 {offsets = [0, 64], sizes = [8, 32], strides = [1, 1]} : vector<8x96xf32> to vector<8x32xf32>
    %248 = arith.mulf %237, %247 : vector<8x32xf32>
    %249 = arith.addf %246, %248 : vector<8x32xf32>
    %250 = math.tanh %249 : vector<8x32xf32>
    %cst_33 = arith.constant 1.000000e+00 : f32
    %251 = vector.broadcast %cst_33 : f32 to vector<8x32xf32>
    %252 = arith.subf %251, %245 : vector<8x32xf32>
    %253 = arith.mulf %252, %250 : vector<8x32xf32>
    %254 = vector.extract_strided_slice %195 {offsets = [8, 0], sizes = [8, 32], strides = [1, 1]} : vector<16x32xf32> to vector<8x32xf32>
    %255 = arith.mulf %245, %254 : vector<8x32xf32>
    %256 = arith.addf %253, %255 : vector<8x32xf32>
    %257 = vector.extract_strided_slice %32 {offsets = [16, 0], sizes = [8, 1], strides = [1, 1]} : vector<72x1xf32> to vector<8x1xf32>
    %258 = vector.extract_strided_slice %32 {offsets = [40, 0], sizes = [8, 1], strides = [1, 1]} : vector<72x1xf32> to vector<8x1xf32>
    %259 = vector.broadcast %257 : vector<8x1xf32> to vector<8x32xf32>
    %260 = arith.mulf %259, %227 : vector<8x32xf32>
    %cst_34 = arith.constant 1.000000e+00 : f32
    %261 = vector.broadcast %cst_34 : f32 to vector<8x1xf32>
    %262 = arith.subf %261, %257 : vector<8x1xf32>
    %263 = vector.extract_strided_slice %195 {offsets = [0, 0], sizes = [8, 32], strides = [1, 1]} : vector<16x32xf32> to vector<8x32xf32>
    %264 = vector.broadcast %262 : vector<8x1xf32> to vector<8x32xf32>
    %265 = arith.mulf %264, %263 : vector<8x32xf32>
    %266 = arith.addf %260, %265 : vector<8x32xf32>
    %267 = vector.broadcast %258 : vector<8x1xf32> to vector<8x32xf32>
    %268 = arith.mulf %267, %256 : vector<8x32xf32>
    %cst_35 = arith.constant 1.000000e+00 : f32
    %269 = vector.broadcast %cst_35 : f32 to vector<8x1xf32>
    %270 = arith.subf %269, %258 : vector<8x1xf32>
    %271 = vector.extract_strided_slice %195 {offsets = [8, 0], sizes = [8, 32], strides = [1, 1]} : vector<16x32xf32> to vector<8x32xf32>
    %272 = vector.broadcast %270 : vector<8x1xf32> to vector<8x32xf32>
    %273 = arith.mulf %272, %271 : vector<8x32xf32>
    %274 = arith.addf %268, %273 : vector<8x32xf32>
    %275 = tpu.concatenate %266, %274 in 0 : vector<8x32xf32>, vector<8x32xf32> -> vector<16x32xf32>
    %cst_36 = arith.constant dense<0.000000e+00> : vector<16x192xf32>
    %276 = tpu.matmul %275, %33, %cst_36 {dimension_numbers = #tpu.dot_dimension_numbers<[1], [0], [0], [1], [0, 0, 1, 1], [], []>} : vector<16x32xf32>, vector<32x192xf32>, vector<16x192xf32> -> vector<16x192xf32>
    %277 = vector.broadcast %34 : vector<1x192xf32> to vector<16x192xf32>
    %278 = arith.addf %276, %277 : vector<16x192xf32>
    %279 = vector.extract_strided_slice %31 {offsets = [24, 0], sizes = [8, 96], strides = [1, 1]} : vector<64x192xf32> to vector<8x96xf32>
    %280 = vector.extract_strided_slice %278 {offsets = [0, 0], sizes = [8, 96], strides = [1, 1]} : vector<16x192xf32> to vector<8x96xf32>
    %281 = vector.extract_strided_slice %279 {offsets = [0, 0], sizes = [8, 32], strides = [1, 1]} : vector<8x96xf32> to vector<8x32xf32>
    %282 = vector.extract_strided_slice %280 {offsets = [0, 0], sizes = [8, 32], strides = [1, 1]} : vector<8x96xf32> to vector<8x32xf32>
    %283 = arith.addf %281, %282 : vector<8x32xf32>
    %284 = arith.negf %283 : vector<8x32xf32>
    %285 = math.exp %284 : vector<8x32xf32>
    %cst_37 = arith.constant 1.000000e+00 : f32
    %286 = vector.broadcast %cst_37 : f32 to vector<8x32xf32>
    %287 = arith.addf %286, %285 : vector<8x32xf32>
    %288 = arith.divf %286, %287 : vector<8x32xf32>
    %289 = vector.extract_strided_slice %279 {offsets = [0, 32], sizes = [8, 32], strides = [1, 1]} : vector<8x96xf32> to vector<8x32xf32>
    %290 = vector.extract_strided_slice %280 {offsets = [0, 32], sizes = [8, 32], strides = [1, 1]} : vector<8x96xf32> to vector<8x32xf32>
    %291 = arith.addf %289, %290 : vector<8x32xf32>
    %292 = arith.negf %291 : vector<8x32xf32>
    %293 = math.exp %292 : vector<8x32xf32>
    %cst_38 = arith.constant 1.000000e+00 : f32
    %294 = vector.broadcast %cst_38 : f32 to vector<8x32xf32>
    %295 = arith.addf %294, %293 : vector<8x32xf32>
    %296 = arith.divf %294, %295 : vector<8x32xf32>
    %297 = vector.extract_strided_slice %279 {offsets = [0, 64], sizes = [8, 32], strides = [1, 1]} : vector<8x96xf32> to vector<8x32xf32>
    %298 = vector.extract_strided_slice %280 {offsets = [0, 64], sizes = [8, 32], strides = [1, 1]} : vector<8x96xf32> to vector<8x32xf32>
    %299 = arith.mulf %288, %298 : vector<8x32xf32>
    %300 = arith.addf %297, %299 : vector<8x32xf32>
    %301 = math.tanh %300 : vector<8x32xf32>
    %cst_39 = arith.constant 1.000000e+00 : f32
    %302 = vector.broadcast %cst_39 : f32 to vector<8x32xf32>
    %303 = arith.subf %302, %296 : vector<8x32xf32>
    %304 = arith.mulf %303, %301 : vector<8x32xf32>
    %305 = vector.extract_strided_slice %275 {offsets = [0, 0], sizes = [8, 32], strides = [1, 1]} : vector<16x32xf32> to vector<8x32xf32>
    %306 = arith.mulf %296, %305 : vector<8x32xf32>
    %307 = arith.addf %304, %306 : vector<8x32xf32>
    %308 = vector.extract_strided_slice %31 {offsets = [32, 96], sizes = [8, 96], strides = [1, 1]} : vector<64x192xf32> to vector<8x96xf32>
    %309 = vector.extract_strided_slice %278 {offsets = [8, 96], sizes = [8, 96], strides = [1, 1]} : vector<16x192xf32> to vector<8x96xf32>
    %310 = vector.extract_strided_slice %308 {offsets = [0, 0], sizes = [8, 32], strides = [1, 1]} : vector<8x96xf32> to vector<8x32xf32>
    %311 = vector.extract_strided_slice %309 {offsets = [0, 0], sizes = [8, 32], strides = [1, 1]} : vector<8x96xf32> to vector<8x32xf32>
    %312 = arith.addf %310, %311 : vector<8x32xf32>
    %313 = arith.negf %312 : vector<8x32xf32>
    %314 = math.exp %313 : vector<8x32xf32>
    %cst_40 = arith.constant 1.000000e+00 : f32
    %315 = vector.broadcast %cst_40 : f32 to vector<8x32xf32>
    %316 = arith.addf %315, %314 : vector<8x32xf32>
    %317 = arith.divf %315, %316 : vector<8x32xf32>
    %318 = vector.extract_strided_slice %308 {offsets = [0, 32], sizes = [8, 32], strides = [1, 1]} : vector<8x96xf32> to vector<8x32xf32>
    %319 = vector.extract_strided_slice %309 {offsets = [0, 32], sizes = [8, 32], strides = [1, 1]} : vector<8x96xf32> to vector<8x32xf32>
    %320 = arith.addf %318, %319 : vector<8x32xf32>
    %321 = arith.negf %320 : vector<8x32xf32>
    %322 = math.exp %321 : vector<8x32xf32>
    %cst_41 = arith.constant 1.000000e+00 : f32
    %323 = vector.broadcast %cst_41 : f32 to vector<8x32xf32>
    %324 = arith.addf %323, %322 : vector<8x32xf32>
    %325 = arith.divf %323, %324 : vector<8x32xf32>
    %326 = vector.extract_strided_slice %308 {offsets = [0, 64], sizes = [8, 32], strides = [1, 1]} : vector<8x96xf32> to vector<8x32xf32>
    %327 = vector.extract_strided_slice %309 {offsets = [0, 64], sizes = [8, 32], strides = [1, 1]} : vector<8x96xf32> to vector<8x32xf32>
    %328 = arith.mulf %317, %327 : vector<8x32xf32>
    %329 = arith.addf %326, %328 : vector<8x32xf32>
    %330 = math.tanh %329 : vector<8x32xf32>
    %cst_42 = arith.constant 1.000000e+00 : f32
    %331 = vector.broadcast %cst_42 : f32 to vector<8x32xf32>
    %332 = arith.subf %331, %325 : vector<8x32xf32>
    %333 = arith.mulf %332, %330 : vector<8x32xf32>
    %334 = vector.extract_strided_slice %275 {offsets = [8, 0], sizes = [8, 32], strides = [1, 1]} : vector<16x32xf32> to vector<8x32xf32>
    %335 = arith.mulf %325, %334 : vector<8x32xf32>
    %336 = arith.addf %333, %335 : vector<8x32xf32>
    %337 = vector.extract_strided_slice %32 {offsets = [24, 0], sizes = [8, 1], strides = [1, 1]} : vector<72x1xf32> to vector<8x1xf32>
    %338 = vector.extract_strided_slice %32 {offsets = [32, 0], sizes = [8, 1], strides = [1, 1]} : vector<72x1xf32> to vector<8x1xf32>
    %339 = vector.broadcast %337 : vector<8x1xf32> to vector<8x32xf32>
    %340 = arith.mulf %339, %307 : vector<8x32xf32>
    %cst_43 = arith.constant 1.000000e+00 : f32
    %341 = vector.broadcast %cst_43 : f32 to vector<8x1xf32>
    %342 = arith.subf %341, %337 : vector<8x1xf32>
    %343 = vector.extract_strided_slice %275 {offsets = [0, 0], sizes = [8, 32], strides = [1, 1]} : vector<16x32xf32> to vector<8x32xf32>
    %344 = vector.broadcast %342 : vector<8x1xf32> to vector<8x32xf32>
    %345 = arith.mulf %344, %343 : vector<8x32xf32>
    %346 = arith.addf %340, %345 : vector<8x32xf32>
    %347 = vector.broadcast %338 : vector<8x1xf32> to vector<8x32xf32>
    %348 = arith.mulf %347, %336 : vector<8x32xf32>
    %cst_44 = arith.constant 1.000000e+00 : f32
    %349 = vector.broadcast %cst_44 : f32 to vector<8x1xf32>
    %350 = arith.subf %349, %338 : vector<8x1xf32>
    %351 = vector.extract_strided_slice %275 {offsets = [8, 0], sizes = [8, 32], strides = [1, 1]} : vector<16x32xf32> to vector<8x32xf32>
    %352 = vector.broadcast %350 : vector<8x1xf32> to vector<8x32xf32>
    %353 = arith.mulf %352, %351 : vector<8x32xf32>
    %354 = arith.addf %348, %353 : vector<8x32xf32>
    %355 = tpu.concatenate %346, %354 in 0 : vector<8x32xf32>, vector<8x32xf32> -> vector<16x32xf32>
    %cst_45 = arith.constant dense<0.000000e+00> : vector<16x192xf32>
    %356 = tpu.matmul %355, %33, %cst_45 {dimension_numbers = #tpu.dot_dimension_numbers<[1], [0], [0], [1], [0, 0, 1, 1], [], []>} : vector<16x32xf32>, vector<32x192xf32>, vector<16x192xf32> -> vector<16x192xf32>
    %357 = vector.broadcast %34 : vector<1x192xf32> to vector<16x192xf32>
    %358 = arith.addf %356, %357 : vector<16x192xf32>
    %359 = vector.extract_strided_slice %31 {offsets = [32, 0], sizes = [8, 96], strides = [1, 1]} : vector<64x192xf32> to vector<8x96xf32>
    %360 = vector.extract_strided_slice %358 {offsets = [0, 0], sizes = [8, 96], strides = [1, 1]} : vector<16x192xf32> to vector<8x96xf32>
    %361 = vector.extract_strided_slice %359 {offsets = [0, 0], sizes = [8, 32], strides = [1, 1]} : vector<8x96xf32> to vector<8x32xf32>
    %362 = vector.extract_strided_slice %360 {offsets = [0, 0], sizes = [8, 32], strides = [1, 1]} : vector<8x96xf32> to vector<8x32xf32>
    %363 = arith.addf %361, %362 : vector<8x32xf32>
    %364 = arith.negf %363 : vector<8x32xf32>
    %365 = math.exp %364 : vector<8x32xf32>
    %cst_46 = arith.constant 1.000000e+00 : f32
    %366 = vector.broadcast %cst_46 : f32 to vector<8x32xf32>
    %367 = arith.addf %366, %365 : vector<8x32xf32>
    %368 = arith.divf %366, %367 : vector<8x32xf32>
    %369 = vector.extract_strided_slice %359 {offsets = [0, 32], sizes = [8, 32], strides = [1, 1]} : vector<8x96xf32> to vector<8x32xf32>
    %370 = vector.extract_strided_slice %360 {offsets = [0, 32], sizes = [8, 32], strides = [1, 1]} : vector<8x96xf32> to vector<8x32xf32>
    %371 = arith.addf %369, %370 : vector<8x32xf32>
    %372 = arith.negf %371 : vector<8x32xf32>
    %373 = math.exp %372 : vector<8x32xf32>
    %cst_47 = arith.constant 1.000000e+00 : f32
    %374 = vector.broadcast %cst_47 : f32 to vector<8x32xf32>
    %375 = arith.addf %374, %373 : vector<8x32xf32>
    %376 = arith.divf %374, %375 : vector<8x32xf32>
    %377 = vector.extract_strided_slice %359 {offsets = [0, 64], sizes = [8, 32], strides = [1, 1]} : vector<8x96xf32> to vector<8x32xf32>
    %378 = vector.extract_strided_slice %360 {offsets = [0, 64], sizes = [8, 32], strides = [1, 1]} : vector<8x96xf32> to vector<8x32xf32>
    %379 = arith.mulf %368, %378 : vector<8x32xf32>
    %380 = arith.addf %377, %379 : vector<8x32xf32>
    %381 = math.tanh %380 : vector<8x32xf32>
    %cst_48 = arith.constant 1.000000e+00 : f32
    %382 = vector.broadcast %cst_48 : f32 to vector<8x32xf32>
    %383 = arith.subf %382, %376 : vector<8x32xf32>
    %384 = arith.mulf %383, %381 : vector<8x32xf32>
    %385 = vector.extract_strided_slice %355 {offsets = [0, 0], sizes = [8, 32], strides = [1, 1]} : vector<16x32xf32> to vector<8x32xf32>
    %386 = arith.mulf %376, %385 : vector<8x32xf32>
    %387 = arith.addf %384, %386 : vector<8x32xf32>
    %388 = vector.extract_strided_slice %31 {offsets = [24, 96], sizes = [8, 96], strides = [1, 1]} : vector<64x192xf32> to vector<8x96xf32>
    %389 = vector.extract_strided_slice %358 {offsets = [8, 96], sizes = [8, 96], strides = [1, 1]} : vector<16x192xf32> to vector<8x96xf32>
    %390 = vector.extract_strided_slice %388 {offsets = [0, 0], sizes = [8, 32], strides = [1, 1]} : vector<8x96xf32> to vector<8x32xf32>
    %391 = vector.extract_strided_slice %389 {offsets = [0, 0], sizes = [8, 32], strides = [1, 1]} : vector<8x96xf32> to vector<8x32xf32>
    %392 = arith.addf %390, %391 : vector<8x32xf32>
    %393 = arith.negf %392 : vector<8x32xf32>
    %394 = math.exp %393 : vector<8x32xf32>
    %cst_49 = arith.constant 1.000000e+00 : f32
    %395 = vector.broadcast %cst_49 : f32 to vector<8x32xf32>
    %396 = arith.addf %395, %394 : vector<8x32xf32>
    %397 = arith.divf %395, %396 : vector<8x32xf32>
    %398 = vector.extract_strided_slice %388 {offsets = [0, 32], sizes = [8, 32], strides = [1, 1]} : vector<8x96xf32> to vector<8x32xf32>
    %399 = vector.extract_strided_slice %389 {offsets = [0, 32], sizes = [8, 32], strides = [1, 1]} : vector<8x96xf32> to vector<8x32xf32>
    %400 = arith.addf %398, %399 : vector<8x32xf32>
    %401 = arith.negf %400 : vector<8x32xf32>
    %402 = math.exp %401 : vector<8x32xf32>
    %cst_50 = arith.constant 1.000000e+00 : f32
    %403 = vector.broadcast %cst_50 : f32 to vector<8x32xf32>
    %404 = arith.addf %403, %402 : vector<8x32xf32>
    %405 = arith.divf %403, %404 : vector<8x32xf32>
    %406 = vector.extract_strided_slice %388 {offsets = [0, 64], sizes = [8, 32], strides = [1, 1]} : vector<8x96xf32> to vector<8x32xf32>
    %407 = vector.extract_strided_slice %389 {offsets = [0, 64], sizes = [8, 32], strides = [1, 1]} : vector<8x96xf32> to vector<8x32xf32>
    %408 = arith.mulf %397, %407 : vector<8x32xf32>
    %409 = arith.addf %406, %408 : vector<8x32xf32>
    %410 = math.tanh %409 : vector<8x32xf32>
    %cst_51 = arith.constant 1.000000e+00 : f32
    %411 = vector.broadcast %cst_51 : f32 to vector<8x32xf32>
    %412 = arith.subf %411, %405 : vector<8x32xf32>
    %413 = arith.mulf %412, %410 : vector<8x32xf32>
    %414 = vector.extract_strided_slice %355 {offsets = [8, 0], sizes = [8, 32], strides = [1, 1]} : vector<16x32xf32> to vector<8x32xf32>
    %415 = arith.mulf %405, %414 : vector<8x32xf32>
    %416 = arith.addf %413, %415 : vector<8x32xf32>
    %417 = vector.extract_strided_slice %32 {offsets = [32, 0], sizes = [8, 1], strides = [1, 1]} : vector<72x1xf32> to vector<8x1xf32>
    %418 = vector.extract_strided_slice %32 {offsets = [24, 0], sizes = [8, 1], strides = [1, 1]} : vector<72x1xf32> to vector<8x1xf32>
    %419 = vector.broadcast %417 : vector<8x1xf32> to vector<8x32xf32>
    %420 = arith.mulf %419, %387 : vector<8x32xf32>
    %cst_52 = arith.constant 1.000000e+00 : f32
    %421 = vector.broadcast %cst_52 : f32 to vector<8x1xf32>
    %422 = arith.subf %421, %417 : vector<8x1xf32>
    %423 = vector.extract_strided_slice %355 {offsets = [0, 0], sizes = [8, 32], strides = [1, 1]} : vector<16x32xf32> to vector<8x32xf32>
    %424 = vector.broadcast %422 : vector<8x1xf32> to vector<8x32xf32>
    %425 = arith.mulf %424, %423 : vector<8x32xf32>
    %426 = arith.addf %420, %425 : vector<8x32xf32>
    %427 = vector.broadcast %418 : vector<8x1xf32> to vector<8x32xf32>
    %428 = arith.mulf %427, %416 : vector<8x32xf32>
    %cst_53 = arith.constant 1.000000e+00 : f32
    %429 = vector.broadcast %cst_53 : f32 to vector<8x1xf32>
    %430 = arith.subf %429, %418 : vector<8x1xf32>
    %431 = vector.extract_strided_slice %355 {offsets = [8, 0], sizes = [8, 32], strides = [1, 1]} : vector<16x32xf32> to vector<8x32xf32>
    %432 = vector.broadcast %430 : vector<8x1xf32> to vector<8x32xf32>
    %433 = arith.mulf %432, %431 : vector<8x32xf32>
    %434 = arith.addf %428, %433 : vector<8x32xf32>
    %435 = tpu.concatenate %426, %434 in 0 : vector<8x32xf32>, vector<8x32xf32> -> vector<16x32xf32>
    %cst_54 = arith.constant dense<0.000000e+00> : vector<16x192xf32>
    %436 = tpu.matmul %435, %33, %cst_54 {dimension_numbers = #tpu.dot_dimension_numbers<[1], [0], [0], [1], [0, 0, 1, 1], [], []>} : vector<16x32xf32>, vector<32x192xf32>, vector<16x192xf32> -> vector<16x192xf32>
    %437 = vector.broadcast %34 : vector<1x192xf32> to vector<16x192xf32>
    %438 = arith.addf %436, %437 : vector<16x192xf32>
    %439 = vector.extract_strided_slice %31 {offsets = [40, 0], sizes = [8, 96], strides = [1, 1]} : vector<64x192xf32> to vector<8x96xf32>
    %440 = vector.extract_strided_slice %438 {offsets = [0, 0], sizes = [8, 96], strides = [1, 1]} : vector<16x192xf32> to vector<8x96xf32>
    %441 = vector.extract_strided_slice %439 {offsets = [0, 0], sizes = [8, 32], strides = [1, 1]} : vector<8x96xf32> to vector<8x32xf32>
    %442 = vector.extract_strided_slice %440 {offsets = [0, 0], sizes = [8, 32], strides = [1, 1]} : vector<8x96xf32> to vector<8x32xf32>
    %443 = arith.addf %441, %442 : vector<8x32xf32>
    %444 = arith.negf %443 : vector<8x32xf32>
    %445 = math.exp %444 : vector<8x32xf32>
    %cst_55 = arith.constant 1.000000e+00 : f32
    %446 = vector.broadcast %cst_55 : f32 to vector<8x32xf32>
    %447 = arith.addf %446, %445 : vector<8x32xf32>
    %448 = arith.divf %446, %447 : vector<8x32xf32>
    %449 = vector.extract_strided_slice %439 {offsets = [0, 32], sizes = [8, 32], strides = [1, 1]} : vector<8x96xf32> to vector<8x32xf32>
    %450 = vector.extract_strided_slice %440 {offsets = [0, 32], sizes = [8, 32], strides = [1, 1]} : vector<8x96xf32> to vector<8x32xf32>
    %451 = arith.addf %449, %450 : vector<8x32xf32>
    %452 = arith.negf %451 : vector<8x32xf32>
    %453 = math.exp %452 : vector<8x32xf32>
    %cst_56 = arith.constant 1.000000e+00 : f32
    %454 = vector.broadcast %cst_56 : f32 to vector<8x32xf32>
    %455 = arith.addf %454, %453 : vector<8x32xf32>
    %456 = arith.divf %454, %455 : vector<8x32xf32>
    %457 = vector.extract_strided_slice %439 {offsets = [0, 64], sizes = [8, 32], strides = [1, 1]} : vector<8x96xf32> to vector<8x32xf32>
    %458 = vector.extract_strided_slice %440 {offsets = [0, 64], sizes = [8, 32], strides = [1, 1]} : vector<8x96xf32> to vector<8x32xf32>
    %459 = arith.mulf %448, %458 : vector<8x32xf32>
    %460 = arith.addf %457, %459 : vector<8x32xf32>
    %461 = math.tanh %460 : vector<8x32xf32>
    %cst_57 = arith.constant 1.000000e+00 : f32
    %462 = vector.broadcast %cst_57 : f32 to vector<8x32xf32>
    %463 = arith.subf %462, %456 : vector<8x32xf32>
    %464 = arith.mulf %463, %461 : vector<8x32xf32>
    %465 = vector.extract_strided_slice %435 {offsets = [0, 0], sizes = [8, 32], strides = [1, 1]} : vector<16x32xf32> to vector<8x32xf32>
    %466 = arith.mulf %456, %465 : vector<8x32xf32>
    %467 = arith.addf %464, %466 : vector<8x32xf32>
    %468 = vector.extract_strided_slice %31 {offsets = [16, 96], sizes = [8, 96], strides = [1, 1]} : vector<64x192xf32> to vector<8x96xf32>
    %469 = vector.extract_strided_slice %438 {offsets = [8, 96], sizes = [8, 96], strides = [1, 1]} : vector<16x192xf32> to vector<8x96xf32>
    %470 = vector.extract_strided_slice %468 {offsets = [0, 0], sizes = [8, 32], strides = [1, 1]} : vector<8x96xf32> to vector<8x32xf32>
    %471 = vector.extract_strided_slice %469 {offsets = [0, 0], sizes = [8, 32], strides = [1, 1]} : vector<8x96xf32> to vector<8x32xf32>
    %472 = arith.addf %470, %471 : vector<8x32xf32>
    %473 = arith.negf %472 : vector<8x32xf32>
    %474 = math.exp %473 : vector<8x32xf32>
    %cst_58 = arith.constant 1.000000e+00 : f32
    %475 = vector.broadcast %cst_58 : f32 to vector<8x32xf32>
    %476 = arith.addf %475, %474 : vector<8x32xf32>
    %477 = arith.divf %475, %476 : vector<8x32xf32>
    %478 = vector.extract_strided_slice %468 {offsets = [0, 32], sizes = [8, 32], strides = [1, 1]} : vector<8x96xf32> to vector<8x32xf32>
    %479 = vector.extract_strided_slice %469 {offsets = [0, 32], sizes = [8, 32], strides = [1, 1]} : vector<8x96xf32> to vector<8x32xf32>
    %480 = arith.addf %478, %479 : vector<8x32xf32>
    %481 = arith.negf %480 : vector<8x32xf32>
    %482 = math.exp %481 : vector<8x32xf32>
    %cst_59 = arith.constant 1.000000e+00 : f32
    %483 = vector.broadcast %cst_59 : f32 to vector<8x32xf32>
    %484 = arith.addf %483, %482 : vector<8x32xf32>
    %485 = arith.divf %483, %484 : vector<8x32xf32>
    %486 = vector.extract_strided_slice %468 {offsets = [0, 64], sizes = [8, 32], strides = [1, 1]} : vector<8x96xf32> to vector<8x32xf32>
    %487 = vector.extract_strided_slice %469 {offsets = [0, 64], sizes = [8, 32], strides = [1, 1]} : vector<8x96xf32> to vector<8x32xf32>
    %488 = arith.mulf %477, %487 : vector<8x32xf32>
    %489 = arith.addf %486, %488 : vector<8x32xf32>
    %490 = math.tanh %489 : vector<8x32xf32>
    %cst_60 = arith.constant 1.000000e+00 : f32
    %491 = vector.broadcast %cst_60 : f32 to vector<8x32xf32>
    %492 = arith.subf %491, %485 : vector<8x32xf32>
    %493 = arith.mulf %492, %490 : vector<8x32xf32>
    %494 = vector.extract_strided_slice %435 {offsets = [8, 0], sizes = [8, 32], strides = [1, 1]} : vector<16x32xf32> to vector<8x32xf32>
    %495 = arith.mulf %485, %494 : vector<8x32xf32>
    %496 = arith.addf %493, %495 : vector<8x32xf32>
    %497 = vector.extract_strided_slice %32 {offsets = [40, 0], sizes = [8, 1], strides = [1, 1]} : vector<72x1xf32> to vector<8x1xf32>
    %498 = vector.extract_strided_slice %32 {offsets = [16, 0], sizes = [8, 1], strides = [1, 1]} : vector<72x1xf32> to vector<8x1xf32>
    %499 = vector.broadcast %497 : vector<8x1xf32> to vector<8x32xf32>
    %500 = arith.mulf %499, %467 : vector<8x32xf32>
    %cst_61 = arith.constant 1.000000e+00 : f32
    %501 = vector.broadcast %cst_61 : f32 to vector<8x1xf32>
    %502 = arith.subf %501, %497 : vector<8x1xf32>
    %503 = vector.extract_strided_slice %435 {offsets = [0, 0], sizes = [8, 32], strides = [1, 1]} : vector<16x32xf32> to vector<8x32xf32>
    %504 = vector.broadcast %502 : vector<8x1xf32> to vector<8x32xf32>
    %505 = arith.mulf %504, %503 : vector<8x32xf32>
    %506 = arith.addf %500, %505 : vector<8x32xf32>
    %507 = vector.broadcast %498 : vector<8x1xf32> to vector<8x32xf32>
    %508 = arith.mulf %507, %496 : vector<8x32xf32>
    %cst_62 = arith.constant 1.000000e+00 : f32
    %509 = vector.broadcast %cst_62 : f32 to vector<8x1xf32>
    %510 = arith.subf %509, %498 : vector<8x1xf32>
    %511 = vector.extract_strided_slice %435 {offsets = [8, 0], sizes = [8, 32], strides = [1, 1]} : vector<16x32xf32> to vector<8x32xf32>
    %512 = vector.broadcast %510 : vector<8x1xf32> to vector<8x32xf32>
    %513 = arith.mulf %512, %511 : vector<8x32xf32>
    %514 = arith.addf %508, %513 : vector<8x32xf32>
    %515 = tpu.concatenate %506, %514 in 0 : vector<8x32xf32>, vector<8x32xf32> -> vector<16x32xf32>
    %cst_63 = arith.constant dense<0.000000e+00> : vector<16x192xf32>
    %516 = tpu.matmul %515, %33, %cst_63 {dimension_numbers = #tpu.dot_dimension_numbers<[1], [0], [0], [1], [0, 0, 1, 1], [], []>} : vector<16x32xf32>, vector<32x192xf32>, vector<16x192xf32> -> vector<16x192xf32>
    %517 = vector.broadcast %34 : vector<1x192xf32> to vector<16x192xf32>
    %518 = arith.addf %516, %517 : vector<16x192xf32>
    %519 = vector.extract_strided_slice %31 {offsets = [48, 0], sizes = [8, 96], strides = [1, 1]} : vector<64x192xf32> to vector<8x96xf32>
    %520 = vector.extract_strided_slice %518 {offsets = [0, 0], sizes = [8, 96], strides = [1, 1]} : vector<16x192xf32> to vector<8x96xf32>
    %521 = vector.extract_strided_slice %519 {offsets = [0, 0], sizes = [8, 32], strides = [1, 1]} : vector<8x96xf32> to vector<8x32xf32>
    %522 = vector.extract_strided_slice %520 {offsets = [0, 0], sizes = [8, 32], strides = [1, 1]} : vector<8x96xf32> to vector<8x32xf32>
    %523 = arith.addf %521, %522 : vector<8x32xf32>
    %524 = arith.negf %523 : vector<8x32xf32>
    %525 = math.exp %524 : vector<8x32xf32>
    %cst_64 = arith.constant 1.000000e+00 : f32
    %526 = vector.broadcast %cst_64 : f32 to vector<8x32xf32>
    %527 = arith.addf %526, %525 : vector<8x32xf32>
    %528 = arith.divf %526, %527 : vector<8x32xf32>
    %529 = vector.extract_strided_slice %519 {offsets = [0, 32], sizes = [8, 32], strides = [1, 1]} : vector<8x96xf32> to vector<8x32xf32>
    %530 = vector.extract_strided_slice %520 {offsets = [0, 32], sizes = [8, 32], strides = [1, 1]} : vector<8x96xf32> to vector<8x32xf32>
    %531 = arith.addf %529, %530 : vector<8x32xf32>
    %532 = arith.negf %531 : vector<8x32xf32>
    %533 = math.exp %532 : vector<8x32xf32>
    %cst_65 = arith.constant 1.000000e+00 : f32
    %534 = vector.broadcast %cst_65 : f32 to vector<8x32xf32>
    %535 = arith.addf %534, %533 : vector<8x32xf32>
    %536 = arith.divf %534, %535 : vector<8x32xf32>
    %537 = vector.extract_strided_slice %519 {offsets = [0, 64], sizes = [8, 32], strides = [1, 1]} : vector<8x96xf32> to vector<8x32xf32>
    %538 = vector.extract_strided_slice %520 {offsets = [0, 64], sizes = [8, 32], strides = [1, 1]} : vector<8x96xf32> to vector<8x32xf32>
    %539 = arith.mulf %528, %538 : vector<8x32xf32>
    %540 = arith.addf %537, %539 : vector<8x32xf32>
    %541 = math.tanh %540 : vector<8x32xf32>
    %cst_66 = arith.constant 1.000000e+00 : f32
    %542 = vector.broadcast %cst_66 : f32 to vector<8x32xf32>
    %543 = arith.subf %542, %536 : vector<8x32xf32>
    %544 = arith.mulf %543, %541 : vector<8x32xf32>
    %545 = vector.extract_strided_slice %515 {offsets = [0, 0], sizes = [8, 32], strides = [1, 1]} : vector<16x32xf32> to vector<8x32xf32>
    %546 = arith.mulf %536, %545 : vector<8x32xf32>
    %547 = arith.addf %544, %546 : vector<8x32xf32>
    %548 = vector.extract_strided_slice %31 {offsets = [8, 96], sizes = [8, 96], strides = [1, 1]} : vector<64x192xf32> to vector<8x96xf32>
    %549 = vector.extract_strided_slice %518 {offsets = [8, 96], sizes = [8, 96], strides = [1, 1]} : vector<16x192xf32> to vector<8x96xf32>
    %550 = vector.extract_strided_slice %548 {offsets = [0, 0], sizes = [8, 32], strides = [1, 1]} : vector<8x96xf32> to vector<8x32xf32>
    %551 = vector.extract_strided_slice %549 {offsets = [0, 0], sizes = [8, 32], strides = [1, 1]} : vector<8x96xf32> to vector<8x32xf32>
    %552 = arith.addf %550, %551 : vector<8x32xf32>
    %553 = arith.negf %552 : vector<8x32xf32>
    %554 = math.exp %553 : vector<8x32xf32>
    %cst_67 = arith.constant 1.000000e+00 : f32
    %555 = vector.broadcast %cst_67 : f32 to vector<8x32xf32>
    %556 = arith.addf %555, %554 : vector<8x32xf32>
    %557 = arith.divf %555, %556 : vector<8x32xf32>
    %558 = vector.extract_strided_slice %548 {offsets = [0, 32], sizes = [8, 32], strides = [1, 1]} : vector<8x96xf32> to vector<8x32xf32>
    %559 = vector.extract_strided_slice %549 {offsets = [0, 32], sizes = [8, 32], strides = [1, 1]} : vector<8x96xf32> to vector<8x32xf32>
    %560 = arith.addf %558, %559 : vector<8x32xf32>
    %561 = arith.negf %560 : vector<8x32xf32>
    %562 = math.exp %561 : vector<8x32xf32>
    %cst_68 = arith.constant 1.000000e+00 : f32
    %563 = vector.broadcast %cst_68 : f32 to vector<8x32xf32>
    %564 = arith.addf %563, %562 : vector<8x32xf32>
    %565 = arith.divf %563, %564 : vector<8x32xf32>
    %566 = vector.extract_strided_slice %548 {offsets = [0, 64], sizes = [8, 32], strides = [1, 1]} : vector<8x96xf32> to vector<8x32xf32>
    %567 = vector.extract_strided_slice %549 {offsets = [0, 64], sizes = [8, 32], strides = [1, 1]} : vector<8x96xf32> to vector<8x32xf32>
    %568 = arith.mulf %557, %567 : vector<8x32xf32>
    %569 = arith.addf %566, %568 : vector<8x32xf32>
    %570 = math.tanh %569 : vector<8x32xf32>
    %cst_69 = arith.constant 1.000000e+00 : f32
    %571 = vector.broadcast %cst_69 : f32 to vector<8x32xf32>
    %572 = arith.subf %571, %565 : vector<8x32xf32>
    %573 = arith.mulf %572, %570 : vector<8x32xf32>
    %574 = vector.extract_strided_slice %515 {offsets = [8, 0], sizes = [8, 32], strides = [1, 1]} : vector<16x32xf32> to vector<8x32xf32>
    %575 = arith.mulf %565, %574 : vector<8x32xf32>
    %576 = arith.addf %573, %575 : vector<8x32xf32>
    %577 = vector.extract_strided_slice %32 {offsets = [48, 0], sizes = [8, 1], strides = [1, 1]} : vector<72x1xf32> to vector<8x1xf32>
    %578 = vector.extract_strided_slice %32 {offsets = [8, 0], sizes = [8, 1], strides = [1, 1]} : vector<72x1xf32> to vector<8x1xf32>
    %579 = vector.broadcast %577 : vector<8x1xf32> to vector<8x32xf32>
    %580 = arith.mulf %579, %547 : vector<8x32xf32>
    %cst_70 = arith.constant 1.000000e+00 : f32
    %581 = vector.broadcast %cst_70 : f32 to vector<8x1xf32>
    %582 = arith.subf %581, %577 : vector<8x1xf32>
    %583 = vector.extract_strided_slice %515 {offsets = [0, 0], sizes = [8, 32], strides = [1, 1]} : vector<16x32xf32> to vector<8x32xf32>
    %584 = vector.broadcast %582 : vector<8x1xf32> to vector<8x32xf32>
    %585 = arith.mulf %584, %583 : vector<8x32xf32>
    %586 = arith.addf %580, %585 : vector<8x32xf32>
    %587 = vector.broadcast %578 : vector<8x1xf32> to vector<8x32xf32>
    %588 = arith.mulf %587, %576 : vector<8x32xf32>
    %cst_71 = arith.constant 1.000000e+00 : f32
    %589 = vector.broadcast %cst_71 : f32 to vector<8x1xf32>
    %590 = arith.subf %589, %578 : vector<8x1xf32>
    %591 = vector.extract_strided_slice %515 {offsets = [8, 0], sizes = [8, 32], strides = [1, 1]} : vector<16x32xf32> to vector<8x32xf32>
    %592 = vector.broadcast %590 : vector<8x1xf32> to vector<8x32xf32>
    %593 = arith.mulf %592, %591 : vector<8x32xf32>
    %594 = arith.addf %588, %593 : vector<8x32xf32>
    %595 = tpu.concatenate %586, %594 in 0 : vector<8x32xf32>, vector<8x32xf32> -> vector<16x32xf32>
    %cst_72 = arith.constant dense<0.000000e+00> : vector<16x192xf32>
    %596 = tpu.matmul %595, %33, %cst_72 {dimension_numbers = #tpu.dot_dimension_numbers<[1], [0], [0], [1], [0, 0, 1, 1], [], []>} : vector<16x32xf32>, vector<32x192xf32>, vector<16x192xf32> -> vector<16x192xf32>
    %597 = vector.broadcast %34 : vector<1x192xf32> to vector<16x192xf32>
    %598 = arith.addf %596, %597 : vector<16x192xf32>
    %599 = vector.extract_strided_slice %31 {offsets = [56, 0], sizes = [8, 96], strides = [1, 1]} : vector<64x192xf32> to vector<8x96xf32>
    %600 = vector.extract_strided_slice %598 {offsets = [0, 0], sizes = [8, 96], strides = [1, 1]} : vector<16x192xf32> to vector<8x96xf32>
    %601 = vector.extract_strided_slice %599 {offsets = [0, 0], sizes = [8, 32], strides = [1, 1]} : vector<8x96xf32> to vector<8x32xf32>
    %602 = vector.extract_strided_slice %600 {offsets = [0, 0], sizes = [8, 32], strides = [1, 1]} : vector<8x96xf32> to vector<8x32xf32>
    %603 = arith.addf %601, %602 : vector<8x32xf32>
    %604 = arith.negf %603 : vector<8x32xf32>
    %605 = math.exp %604 : vector<8x32xf32>
    %cst_73 = arith.constant 1.000000e+00 : f32
    %606 = vector.broadcast %cst_73 : f32 to vector<8x32xf32>
    %607 = arith.addf %606, %605 : vector<8x32xf32>
    %608 = arith.divf %606, %607 : vector<8x32xf32>
    %609 = vector.extract_strided_slice %599 {offsets = [0, 32], sizes = [8, 32], strides = [1, 1]} : vector<8x96xf32> to vector<8x32xf32>
    %610 = vector.extract_strided_slice %600 {offsets = [0, 32], sizes = [8, 32], strides = [1, 1]} : vector<8x96xf32> to vector<8x32xf32>
    %611 = arith.addf %609, %610 : vector<8x32xf32>
    %612 = arith.negf %611 : vector<8x32xf32>
    %613 = math.exp %612 : vector<8x32xf32>
    %cst_74 = arith.constant 1.000000e+00 : f32
    %614 = vector.broadcast %cst_74 : f32 to vector<8x32xf32>
    %615 = arith.addf %614, %613 : vector<8x32xf32>
    %616 = arith.divf %614, %615 : vector<8x32xf32>
    %617 = vector.extract_strided_slice %599 {offsets = [0, 64], sizes = [8, 32], strides = [1, 1]} : vector<8x96xf32> to vector<8x32xf32>
    %618 = vector.extract_strided_slice %600 {offsets = [0, 64], sizes = [8, 32], strides = [1, 1]} : vector<8x96xf32> to vector<8x32xf32>
    %619 = arith.mulf %608, %618 : vector<8x32xf32>
    %620 = arith.addf %617, %619 : vector<8x32xf32>
    %621 = math.tanh %620 : vector<8x32xf32>
    %cst_75 = arith.constant 1.000000e+00 : f32
    %622 = vector.broadcast %cst_75 : f32 to vector<8x32xf32>
    %623 = arith.subf %622, %616 : vector<8x32xf32>
    %624 = arith.mulf %623, %621 : vector<8x32xf32>
    %625 = vector.extract_strided_slice %595 {offsets = [0, 0], sizes = [8, 32], strides = [1, 1]} : vector<16x32xf32> to vector<8x32xf32>
    %626 = arith.mulf %616, %625 : vector<8x32xf32>
    %627 = arith.addf %624, %626 : vector<8x32xf32>
    %628 = vector.extract_strided_slice %31 {offsets = [0, 96], sizes = [8, 96], strides = [1, 1]} : vector<64x192xf32> to vector<8x96xf32>
    %629 = vector.extract_strided_slice %598 {offsets = [8, 96], sizes = [8, 96], strides = [1, 1]} : vector<16x192xf32> to vector<8x96xf32>
    %630 = vector.extract_strided_slice %628 {offsets = [0, 0], sizes = [8, 32], strides = [1, 1]} : vector<8x96xf32> to vector<8x32xf32>
    %631 = vector.extract_strided_slice %629 {offsets = [0, 0], sizes = [8, 32], strides = [1, 1]} : vector<8x96xf32> to vector<8x32xf32>
    %632 = arith.addf %630, %631 : vector<8x32xf32>
    %633 = arith.negf %632 : vector<8x32xf32>
    %634 = math.exp %633 : vector<8x32xf32>
    %cst_76 = arith.constant 1.000000e+00 : f32
    %635 = vector.broadcast %cst_76 : f32 to vector<8x32xf32>
    %636 = arith.addf %635, %634 : vector<8x32xf32>
    %637 = arith.divf %635, %636 : vector<8x32xf32>
    %638 = vector.extract_strided_slice %628 {offsets = [0, 32], sizes = [8, 32], strides = [1, 1]} : vector<8x96xf32> to vector<8x32xf32>
    %639 = vector.extract_strided_slice %629 {offsets = [0, 32], sizes = [8, 32], strides = [1, 1]} : vector<8x96xf32> to vector<8x32xf32>
    %640 = arith.addf %638, %639 : vector<8x32xf32>
    %641 = arith.negf %640 : vector<8x32xf32>
    %642 = math.exp %641 : vector<8x32xf32>
    %cst_77 = arith.constant 1.000000e+00 : f32
    %643 = vector.broadcast %cst_77 : f32 to vector<8x32xf32>
    %644 = arith.addf %643, %642 : vector<8x32xf32>
    %645 = arith.divf %643, %644 : vector<8x32xf32>
    %646 = vector.extract_strided_slice %628 {offsets = [0, 64], sizes = [8, 32], strides = [1, 1]} : vector<8x96xf32> to vector<8x32xf32>
    %647 = vector.extract_strided_slice %629 {offsets = [0, 64], sizes = [8, 32], strides = [1, 1]} : vector<8x96xf32> to vector<8x32xf32>
    %648 = arith.mulf %637, %647 : vector<8x32xf32>
    %649 = arith.addf %646, %648 : vector<8x32xf32>
    %650 = math.tanh %649 : vector<8x32xf32>
    %cst_78 = arith.constant 1.000000e+00 : f32
    %651 = vector.broadcast %cst_78 : f32 to vector<8x32xf32>
    %652 = arith.subf %651, %645 : vector<8x32xf32>
    %653 = arith.mulf %652, %650 : vector<8x32xf32>
    %654 = vector.extract_strided_slice %595 {offsets = [8, 0], sizes = [8, 32], strides = [1, 1]} : vector<16x32xf32> to vector<8x32xf32>
    %655 = arith.mulf %645, %654 : vector<8x32xf32>
    %656 = arith.addf %653, %655 : vector<8x32xf32>
    %657 = vector.extract_strided_slice %32 {offsets = [56, 0], sizes = [8, 1], strides = [1, 1]} : vector<72x1xf32> to vector<8x1xf32>
    %658 = vector.extract_strided_slice %32 {offsets = [0, 0], sizes = [8, 1], strides = [1, 1]} : vector<72x1xf32> to vector<8x1xf32>
    %659 = vector.broadcast %657 : vector<8x1xf32> to vector<8x32xf32>
    %660 = arith.mulf %659, %627 : vector<8x32xf32>
    %cst_79 = arith.constant 1.000000e+00 : f32
    %661 = vector.broadcast %cst_79 : f32 to vector<8x1xf32>
    %662 = arith.subf %661, %657 : vector<8x1xf32>
    %663 = vector.extract_strided_slice %595 {offsets = [0, 0], sizes = [8, 32], strides = [1, 1]} : vector<16x32xf32> to vector<8x32xf32>
    %664 = vector.broadcast %662 : vector<8x1xf32> to vector<8x32xf32>
    %665 = arith.mulf %664, %663 : vector<8x32xf32>
    %666 = arith.addf %660, %665 : vector<8x32xf32>
    %667 = vector.broadcast %658 : vector<8x1xf32> to vector<8x32xf32>
    %668 = arith.mulf %667, %656 : vector<8x32xf32>
    %cst_80 = arith.constant 1.000000e+00 : f32
    %669 = vector.broadcast %cst_80 : f32 to vector<8x1xf32>
    %670 = arith.subf %669, %658 : vector<8x1xf32>
    %671 = vector.extract_strided_slice %595 {offsets = [8, 0], sizes = [8, 32], strides = [1, 1]} : vector<16x32xf32> to vector<8x32xf32>
    %672 = vector.broadcast %670 : vector<8x1xf32> to vector<8x32xf32>
    %673 = arith.mulf %672, %671 : vector<8x32xf32>
    %674 = arith.addf %668, %673 : vector<8x32xf32>
    %675 = tpu.concatenate %666, %674 in 0 : vector<8x32xf32>, vector<8x32xf32> -> vector<16x32xf32>
    %676 = tpu.concatenate %67, %656 in 1 : vector<8x32xf32>, vector<8x32xf32> -> vector<8x64xf32>
    %677 = tpu.concatenate %147, %576 in 1 : vector<8x32xf32>, vector<8x32xf32> -> vector<8x64xf32>
    %678 = tpu.concatenate %227, %496 in 1 : vector<8x32xf32>, vector<8x32xf32> -> vector<8x64xf32>
    %679 = tpu.concatenate %307, %416 in 1 : vector<8x32xf32>, vector<8x32xf32> -> vector<8x64xf32>
    %680 = tpu.concatenate %387, %336 in 1 : vector<8x32xf32>, vector<8x32xf32> -> vector<8x64xf32>
    %681 = tpu.concatenate %467, %256 in 1 : vector<8x32xf32>, vector<8x32xf32> -> vector<8x64xf32>
    %682 = tpu.concatenate %547, %176 in 1 : vector<8x32xf32>, vector<8x32xf32> -> vector<8x64xf32>
    %683 = tpu.concatenate %627, %96 in 1 : vector<8x32xf32>, vector<8x32xf32> -> vector<8x64xf32>
    %684 = vector.extract_strided_slice %675 {offsets = [0, 0], sizes = [8, 32], strides = [1, 1]} : vector<16x32xf32> to vector<8x32xf32>
    %685 = vector.extract_strided_slice %675 {offsets = [8, 0], sizes = [8, 32], strides = [1, 1]} : vector<16x32xf32> to vector<8x32xf32>
    %686 = tpu.concatenate %684, %685 in 1 : vector<8x32xf32>, vector<8x32xf32> -> vector<8x64xf32>
    %687 = tpu.concatenate %676, %677, %678, %679, %680, %681, %682, %683, %686 in 0 : vector<8x64xf32>, vector<8x64xf32>, vector<8x64xf32>, vector<8x64xf32>, vector<8x64xf32>, vector<8x64xf32>, vector<8x64xf32>, vector<8x64xf32>, vector<8x64xf32> -> vector<72x64xf32>
    %688 = vector.broadcast %32 : vector<72x1xf32> to vector<72x64xf32>
    %689 = arith.mulf %687, %688 : vector<72x64xf32>
    %c0_81 = arith.constant 0 : index
    %c0_82 = arith.constant 0 : index
    %690 = vector.load %arg4[%c0_81, %c0_82] : memref<65x32xf32, #tpu.memory_space<vmem>>, vector<64x32xf32>
    %c64 = arith.constant 64 : index
    %c0_83 = arith.constant 0 : index
    %691 = vector.load %arg4[%c64, %c0_83] : memref<65x32xf32, #tpu.memory_space<vmem>>, vector<1x32xf32>
    %cst_84 = arith.constant dense<0.000000e+00> : vector<72x32xf32>
    %692 = tpu.matmul %689, %690, %cst_84 {dimension_numbers = #tpu.dot_dimension_numbers<[1], [0], [0], [1], [0, 0, 1, 1], [], []>} : vector<72x64xf32>, vector<64x32xf32>, vector<72x32xf32> -> vector<72x32xf32>
    %693 = vector.broadcast %691 : vector<1x32xf32> to vector<72x32xf32>
    %694 = arith.addf %692, %693 : vector<72x32xf32>
    %c0_85 = arith.constant 0 : index
    %c0_86 = arith.constant 0 : index
    %695 = vector.load %arg5[%c0_85, %c0_86] : memref<72x32xf32, #tpu.memory_space<vmem>>, vector<72x32xf32>
    tpu.vector_store %arg5[%c0_85, %c0_86], %694 {strides = array<i32>} : memref<72x32xf32, #tpu.memory_space<vmem>>, vector<72x32xf32>,
    return
  }
}

</mosaic_0001>

<bundles_post_ra>
// kernel: tpu_custom_call.1
= control target key start
LH: loop header
LB: loop body
LE: loop exit
PB: predicated region body
PF: predicated region fallthrough
CT: control target
= control target key end

     0   :  { %v2381_v0 = vmov 0   ;;  %v3337_v6 = vmov 0.0   ;;  %vm300_vm0 = vcmask 1040384   ;;  %v2383_v9 = vmov 2   ;;  %s2386_s11 = smov 64   ;;  %s2387_s16 = smov 96   ;;  %s3331_s0 = inlined_call_operand.vmem [shape: s32[64,4], index: 0, kind: input, shape index: {}]   ;;  %s3332_s3 = inlined_call_operand.vmem [shape: f32[33,192], index: 3, kind: input, shape index: {}]   ;;  %s3333_s2 = inlined_call_operand.vmem [shape: f32[65,192], index: 2, kind: input, shape index: {}]   ;;  %s3334_s1 = inlined_call_operand.vmem [shape: f32[72,1], index: 1, kind: input, shape index: {}]   ;;  %s3335_s4 = inlined_call_operand.vmem [shape: f32[65,32], index: 4, kind: input, shape index: {}]   ;;  %s3336_s5 = inlined_call_operand.vmem [shape: f32[72,32], index: 5, kind: output, shape index: {}]  }
   0x1   :  { %2217 = vset.pattern.permute.xlu1 %v2381_v0  ;;  %2216 = vset.pattern.permute.xlu0 %v2381_v0  ;;  %v2425_v1 = vld [vmem:[%s3331_s0 + $0x8] sm:$0xff]  ;;  %v20_v2 = vld [vmem:[%s3331_s0] sm:$0xff]  ;;  %v2439_v4 = vld [vmem:[%s3332_s3 + $0x38] sm:$0xff]  ;;  %v2384_v15 = vmov 3   ;;  %v2385_v18 = vmov 1   ;;  %v28_v42 = vlaneseq  ;;  %vm275_vm9 = vcmask 531456  }
   0x2   :  { %37 = vperm.xlu1 %2217, %v2425_v1   ;;  %34 = vperm.xlu0 %2216, %v20_v2   ;;  %v2434_v3 = vld [vmem:[%s3331_s0 + $0x20] sm:$0xff]  ;;  %v2444_v5 = vld [vmem:[%s3332_s3 + $0x30] sm:$0xff]  ;;  %v2452_v7 = vld [vmem:[%s3332_s3 + $0x28] sm:$0xff]  ;;  %s2388_s17 = smov 32  }
   0x3   :  { %518 = vmatprep.mubr.f32.mxu1 %v3337_v6  ;;  %371 = vmatprep.mubr.f32.mxu0 %v3337_v6  ;;  %v2458_v8 = vld [vmem:[%s3332_s3 + $0x20] sm:$0xff]  ;;  %v2465_v10 = vld [vmem:[%s3332_s3 + $0x18] sm:$0xff]  ;;  %v274_v11 = vld [vmem:[%s3333_s2 + $0x88] sm:$0x1]  ;;  %v2618_v44 = vand.u32 127, %v28_v42 }
   0x4   :  { %478 = vmatprep.subr.mxu1 %v2439_v4  ;;  %v2474_v12 = vld [vmem:[%s3332_s3 + $0x10] sm:$0xff]  ;;  %v273_v13 = vld [vmem:[%s3333_s2 + $0x80] sm:$0x1]  ;;  %2088 = vmatprep.subr.msk.mxu0 %vm300_vm0, %v274_v11  ;;  %v2484_v14 = vld [vmem:[%s3332_s3 + $0x8] sm:$0xff] }
   0x5   :  { %479 = vmatpush1.msra.mxu1 %v2444_v5  ;;  %2089 = vmatpush1.msk.msra.mxu0 %vm300_vm0, %v273_v13  ;;  %v2491_v16 = vld [vmem:[%s3332_s3] sm:$0xff]  ;;  %v272_v17 = vld [vmem:[%s3333_s2 + $0x78] sm:$0xff]  ;;  %v271_v19 = vld [vmem:[%s3333_s2 + $0x70] sm:$0xff]  ;;  %vm30_vm2 = vcmp.eq.s32.totalorder %v2618_v44, 64 }
   0x6   :  { %2218 = vset.pattern.permute.xlu1 %v2383_v9  ;;  %46 = vperm.xlu0 %2216, %v2434_v3   ;;  %v2504_v20 = vld [vmem:[%s3331_s0 + $0x18] sm:$0xff]  ;;  %v270_v21 = vld [vmem:[%s3333_s2 + $0x68] sm:$0xff]  ;;  %v269_v22 = vld [vmem:[%s3333_s2 + $0x60] sm:$0xff]  ;;  %v2626_v50 = vsel %vm30_vm2, 1.0, %v3337_v6 }
   0x7   :  { %146 = vperm.xlu1 %2218, %v20_v2   ;;  %480 = vmatprep.subr.mxu1 %v2452_v7  ;;  %v2517_v23 = vld [vmem:[%s3331_s0 + $0x10] sm:$0xff]  ;;  %v268_v24 = vld [vmem:[%s3333_s2 + $0x58] sm:$0xff]  ;;  %v266_v26 = vld [vmem:[%s3333_s2 + $0x48] sm:$0xff] }
   0x8   :  { %481 = vmatpush1.msra.mxu1 %v2458_v8  ;;  %323 = vmatprep.subr.mxu0 %v272_v17  ;;  %v267_v25 = vld [vmem:[%s3333_s2 + $0x50] sm:$0xff]  ;;  %v265_v27 = vld [vmem:[%s3333_s2 + $0x40] sm:$0xff]  ;;  %v264_v28 = vld [vmem:[%s3333_s2 + $0x38] sm:$0xff] }
   0x9   :  { %482 = vmatprep.subr.mxu1 %v2465_v10  ;;  %324 = vmatpush1.msra.mxu0 %v271_v19  ;;  %v263_v29 = vld [vmem:[%s3333_s2 + $0x30] sm:$0xff]  ;;  %v262_v30 = vld [vmem:[%s3333_s2 + $0x28] sm:$0xff]  ;;  %v261_v31 = vld [vmem:[%s3333_s2 + $0x20] sm:$0xff] }
   0xa   :  { %2226 = vset.pattern.permute.xlu0 %v2384_v15  ;;  %483 = vmatpush1.msra.mxu1 %v2474_v12  ;;  %v260_v32 = vld [vmem:[%s3333_s2 + $0x18] sm:$0xff]  ;;  %v259_v33 = vld [vmem:[%s3333_s2 + $0x10] sm:$0xff]  ;;  %v25_v34 = vld [vmem:[%s3331_s0 + $0x28] sm:$0xff] }
   0xb   :  { %2219 = vset.pattern.permute.xlu1 %v2385_v18  ;;  %202 = vperm.xlu0 %2226, %v20_v2   ;;  %v258_v35 = vld [vmem:[%s3333_s2 + $0x8] sm:$0xff]  ;;  %v257_v36 = vld [vmem:[%s3333_s2] sm:$0xff]  ;;  %v27_v37 = vld [vmem:[%s3331_s0 + $0x38] sm:$0xff] }
   0xc   :  { %93 = vperm.xlu1 %2219, %v2425_v1   ;;  %484 = vmatprep.subr.mxu1 %v2484_v14  ;;  %v26_v38 = vld [vmem:[%s3331_s0 + $0x30] sm:$0xff] }
   0xd   :  { %485 = vmatpush1.msra.mxu1 %v2491_v16  ;;  %325 = vmatprep.subr.mxu0 %v270_v21 }
   0xe   :  { %519 = vmatmul.mubr.f32.vlgmr.msra.gmra.mxu1 %v3337_v6  ;;  %326 = vmatpush1.msra.mxu0 %v269_v22 }
   0xf   :  { %211 = vperm.xlu0 %2226, %v2504_v20   ;;  %327 = vmatprep.subr.mxu0 %v268_v24 }
  0x10   :  { %2220 = vset.pattern.permute.xlu1 %v2381_v0  ;;  %328 = vmatpush1.msra.mxu0 %v267_v25 }
  0x11   :  { %40 = vperm.xlu1 %2220, %v2517_v23   ;;  %523 = vmatprep.mubr.f32.mxu1 %v3337_v6 }
  0x12   :  { %329 = vmatprep.subr.mxu0 %v266_v26  ;;  %524 = vmatmul.mubr.f32.gmra.mxu1 %v3337_v6 }
  0x13   :  { %2229 = vset.pattern.permute.xlu0 %v2385_v18  ;;  %330 = vmatpush1.msra.mxu0 %v265_v27 }
  0x14   :  { %90 = vperm.xlu0 %2229, %v20_v2   ;;  %331 = vmatprep.subr.mxu0 %v264_v28 }
  0x15   :  { %2221 = vset.pattern.permute.xlu1 %v2383_v9  ;;  %332 = vmatpush1.msra.mxu0 %v263_v29 }
  0x16   :  { %149 = vperm.xlu1 %2221, %v2425_v1   ;;  %654 = vmatprep.subr.mxu1 %v2439_v4 }
  0x17   :  { %333 = vmatprep.subr.mxu0 %v262_v30  ;;  %655 = vmatpush1.msra.mxu1 %v2444_v5 }
  0x18   :  { %96 = vperm.xlu0 %2229, %v2517_v23   ;;  %334 = vmatpush1.msra.mxu0 %v261_v31 }
  0x19   :  { %335 = vmatprep.subr.mxu0 %v260_v32  ;;  %656 = vmatprep.subr.mxu1 %v2452_v7 }
  0x1a   :  { %2222 = vset.pattern.permute.xlu1 %v2384_v15  ;;  %336 = vmatpush1.msra.mxu0 %v259_v33 }
  0x1b   :  { %205 = vperm.xlu1 %2222, %v2425_v1   ;;  %337 = vmatprep.subr.mxu0 %v258_v35 }
  0x1c   :  { %105 = vperm.xlu0 %2229, %v25_v34   ;;  %338 = vmatpush1.msra.mxu0 %v257_v36 }
  0x1d   :  { %657 = vmatpush1.msra.mxu1 %v2458_v8  ;;  %694 = vmatprep.mubr.f32.mxu1 %v3337_v6 }
  0x1e   :  { %658 = vmatprep.subr.mxu1 %v2465_v10  ;;  %2164 = vmatprep.subr.mxu0 %v3337_v6 }
  0x1f   :  { %2223 = vset.pattern.permute.xlu1 %v2381_v0  ;;  %659 = vmatpush1.msra.mxu1 %v2474_v12 }
  0x20   :  { %43 = vperm.xlu1 %2223, %v2504_v20   ;;  %2232 = vset.pattern.permute.xlu0 %v2383_v9 }
  0x21   :  { %152 = vperm.xlu0 %2232, %v2517_v23   ;;  %660 = vmatprep.subr.mxu1 %v2484_v14 }
  0x22   :  { %661 = vmatpush1.msra.mxu1 %v2491_v16 }
  0x23   :  { %835 = vmatprep.subr.mxu1 %v2439_v4 }
  0x24   :  { %2224 = vset.pattern.permute.xlu1 %v2385_v18 }
  0x25   :  { %99 = vperm.xlu1 %2224, %v2504_v20   ;;  %161 = vperm.xlu0 %2232, %v25_v34  }
  0x29   :  { %2225 = vset.pattern.permute.xlu1 %v2384_v15  ;;  %2237 = vset.pattern.permute.xlu0 %v2381_v0 }
  0x2a   :  { %208 = vperm.xlu1 %2225, %v2517_v23   ;;  %55 = vperm.xlu0 %2237, %v27_v37  }
  0x2e   :  { %2227 = vset.pattern.permute.xlu1 %v2383_v9  ;;  %2240 = vset.pattern.permute.xlu0 %v2384_v15 }
  0x2f   :  { %155 = vperm.xlu1 %2227, %v2504_v20   ;;  %220 = vperm.xlu0 %2240, %v26_v38  }
  0x33   :  { %2228 = vset.pattern.permute.xlu1 %v2385_v18  ;;  %2243 = vset.pattern.permute.xlu0 %v2381_v0 }
  0x34   :  { %102 = vperm.xlu1 %2228, %v2434_v3  }
  0x38   :  { %2230 = vset.pattern.permute.xlu1 %v2381_v0 }
  0x39   :  { %49 = vperm.xlu1 %2230, %v25_v34  }
  0x3d   :  { %2231 = vset.pattern.permute.xlu1 %v2383_v9 }
  0x3e   :  { %158 = vperm.xlu1 %2231, %v2434_v3  }
  0x42   :  { %2233 = vset.pattern.permute.xlu1 %v2384_v15 }
  0x43   :  { %214 = vperm.xlu1 %2233, %v2434_v3  }
  0x47   :  { %2234 = vset.pattern.permute.xlu1 %v2381_v0 }
  0x48   :  { %52 = vperm.xlu1 %2234, %v26_v38  }
  0x4c   :  { %2235 = vset.pattern.permute.xlu1 %v2385_v18 }
  0x4d   :  { %108 = vperm.xlu1 %2235, %v26_v38  }
  0x51   :  { %2236 = vset.pattern.permute.xlu1 %v2384_v15 }
  0x52   :  { %217 = vperm.xlu1 %2236, %v25_v34  }
  0x56   :  { %2238 = vset.pattern.permute.xlu1 %v2383_v9 }
  0x57   :  { %164 = vperm.xlu1 %2238, %v26_v38  }
  0x5b   :  { %2239 = vset.pattern.permute.xlu1 %v2385_v18 }
  0x5c   :  { %111 = vperm.xlu1 %2239, %v27_v37  }
  0x60   :  { %2241 = vset.pattern.permute.xlu1 %v2383_v9 }
  0x61   :  { %167 = vperm.xlu1 %2241, %v27_v37  }
  0x65   :  { %2242 = vset.pattern.permute.xlu1 %v2384_v15 }
  0x66   :  { %223 = vperm.xlu1 %2242, %v27_v37  }
  0x6a   :  { %2244 = vset.pattern.permute.xlu1 %v2381_v0 }
  0x7d   :  { %v38_v39 = vpop.permute.xlu1 %37  ;;  %v35_v40 = vpop.permute.xlu0 %34 }
  0x7e   :  { %vm57_vm1 = vcmp.eq.s32.totalorder %v35_v40, %v2618_v44  ;;  %vm58_vm3 = vcmp.eq.s32.totalorder %v38_v39, %v2618_v44 }
  0x7f   :  { %v2056_v48 = vsel %vm57_vm1, 1.0, %v3337_v6  ;;  %v2057_v53 = vsel %vm58_vm3, 1.0, %v3337_v6 }
  0x80   :  { %v81_v51 = vadd.f32 %v2056_v48, %v2626_v50  ;;  %v82_v58 = vadd.f32 %v2057_v53, %v2626_v50 }
  0x81   :  { %v2615_v41 = vpop.permute.xlu0 %46 }
  0x82   :  { %v147_v43 = vpop.permute.xlu1 %146  ;;  %vm61_vm3 = vcmp.eq.s32.totalorder %v2615_v41, %v2618_v44 }
  0x83   :  { %vm169_vm5 = vcmp.eq.s32.totalorder %v147_v43, %v2618_v44  ;;  %v2060_v39 = vsel %vm61_vm3, 1.0, %v3337_v6 }
  0x84   :  { %v2072_v59 = vsel %vm169_vm5, 1.0, %v3337_v6  ;;  %v85_v40 = vadd.f32 %v2060_v39, %v2626_v50 }
  0x86   :  { %v203_v45 = vpop.permute.xlu0 %202 }
  0x87   :  { %v94_v46 = vpop.permute.xlu1 %93  ;;  %vm225_vm6 = vcmp.eq.s32.totalorder %v203_v45, %v2618_v44 }
  0x88   :  { %vm114_vm4 = vcmp.eq.s32.totalorder %v94_v46, %v2618_v44  ;;  %v2080_v60 = vsel %vm225_vm6, 1.0, %v3337_v6 }
  0x89   :  { %v2065_v56 = vsel %vm114_vm4, 1.0, %v3337_v6 }
  0x8a   :  { %v2622_v47 = vpop.permute.xlu0 %211  ;;  %v138_v0 = vadd.f32 %v2065_v56, %v82_v58 }
  0x8b   :  { %vm228_vm1 = vcmp.eq.s32.totalorder %v2622_v47, %v2618_v44 }
  0x8c   :  { %v41_v49 = vpop.permute.xlu1 %40  ;;  %v2083_v33 = vsel %vm228_vm1, 1.0, %v3337_v6 }
  0x8d   :  { %vm59_vm11 = vcmp.eq.s32.totalorder %v41_v49, %v2618_v44 }
  0x8e   :  { %v2058_v18 = vsel %vm59_vm11, 1.0, %v3337_v6 }
  0x8f   :  { %v91_v52 = vpop.permute.xlu0 %90  ;;  %v83_v21 = vadd.f32 %v2058_v18, %v2626_v50 }
  0x90   :  { %vm113_vm7 = vcmp.eq.s32.totalorder %v91_v52, %v2618_v44  ;;  %v441_v52 = vshrl.u32 %v28_v42, 7  ;;  %v2098_v42 = vld [vmem:[%s3332_s3 + $0x40] ss:$8 sm:$0x3] }
  0x91   :  { %v2064_v54 = vsel %vm113_vm7, 1.0, %v3337_v6  ;;  %v150_v55 = vpop.permute.xlu1 %149 }
  0x92   :  { %v137_v57 = vadd.f32 %v2064_v54, %v81_v51  ;;  %vm170_vm8 = vcmp.eq.s32.totalorder %v150_v55, %v2618_v44 }
  0x93   :  { %v97_v61 = vpop.permute.xlu0 %96  ;;  %v2073_v63 = vsel %vm170_vm8, 1.0, %v3337_v6 }
  0x94   :  { %v193_v62 = vadd.f32 %v2072_v59, %v137_v57  ;;  %v194_v3 = vadd.f32 %v2073_v63, %v138_v0  ;;  %vm115_vm12 = vcmp.eq.s32.totalorder %v97_v61, %v2618_v44  ;;  %v442_v57 = vsub.s32 0, %v441_v52 }
  0x95   :  { %v2066_v20 = vsel %vm115_vm12, 1.0, %v3337_v6 }
  0x96   :  { %v206_v1 = vpop.permute.xlu1 %205  ;;  %v249_v2 = vadd.f32 %v2080_v60, %v193_v62  ;;  %v139_v23 = vadd.f32 %v2066_v20, %v83_v21  ;;  %v2696_v62 = vrot.slane %v2098_v42, %v442_v57 }
  0x97   :  { %vm226_vm10 = vcmp.eq.s32.totalorder %v206_v1, %v2618_v44  ;;  %v2643_v9 = vpop.permute.xlu0 %105 }
  0x98   :  { %v2081_v11 = vsel %vm226_vm10, 1.0, %v3337_v6  ;;  %2090 = vmatmul.mubr.msk.f32.vlgmr.msra.gmra.mxu0 %vm275_vm9, %v249_v2  ;;  %vm118_vm8 = vcmp.eq.s32.totalorder %v2643_v9, %v2618_v44 }
  0x99   :  { %v250_v13 = vadd.f32 %v2081_v11, %v194_v3  ;;  %377 = vmatprep.mubr.f32.mxu0 %v3337_v6  ;;  %v2069_v58 = vsel %vm118_vm8, 1.0, %v3337_v6 }
  0x9b   :  { %v44_v15 = vpop.permute.xlu1 %43 }
  0x9c   :  { %2091 = vmatmul.mubr.msk.f32.gmra.mxu0 %vm275_vm9, %v250_v13  ;;  %v153_v17 = vpop.permute.xlu0 %152  ;;  %vm60_vm14 = vcmp.eq.s32.totalorder %v44_v15, %v2618_v44 }
  0x9d   :  { %383 = vmatprep.mubr.f32.mxu0 %v3337_v6  ;;  %vm171_vm13 = vcmp.eq.s32.totalorder %v153_v17, %v2618_v44  ;;  %v2059_v25 = vsel %vm60_vm14, 1.0, %v3337_v6 }
  0x9e   :  { %v2074_v22 = vsel %vm171_vm13, 1.0, %v3337_v6  ;;  %v84_v30 = vadd.f32 %v2059_v25, %v2626_v50 }
  0x9f   :  { %v195_v26 = vadd.f32 %v2074_v22, %v139_v23 }
  0xa0   :  { %v100_v19 = vpop.permute.xlu1 %99  ;;  %v162_v55 = vpop.permute.xlu0 %161 }
  0xa1   :  { %vm116_vm15 = vcmp.eq.s32.totalorder %v100_v19, %v2618_v44  ;;  %vm174_vm10 = vcmp.eq.s32.totalorder %v162_v55, %v2618_v44  ;;  %v446_v19 = vsub.s32 1, %v441_v52 }
  0xa2   :  { %v2067_v28 = vsel %vm116_vm15, 1.0, %v3337_v6  ;;  %v2077_v63 = vsel %vm174_vm10, 1.0, %v3337_v6 }
  0xa3   :  { %v140_v32 = vadd.f32 %v2067_v28, %v84_v30  ;;  %v2714_v25 = vrot.slane %v2098_v42, %v446_v19 }
  0xa5   :  { %v209_v24 = vpop.permute.xlu1 %208  ;;  %v56_v60 = vpop.permute.xlu0 %55 }
  0xa6   :  { %vm227_vm0 = vcmp.eq.s32.totalorder %v209_v24, %v2618_v44 }
  0xa7   :  { %v2082_v27 = vsel %vm227_vm0, 1.0, %v3337_v6  ;;  %vm64_vm0 = vcmp.eq.s32.totalorder %v56_v60, %v2618_v44 }
  0xa8   :  { %v251_v29 = vadd.f32 %v2082_v27, %v195_v26 }
  0xaa   :  { %v156_v31 = vpop.permute.xlu1 %155  ;;  %2092 = vmatmul.mubr.msk.f32.gmra.mxu0 %vm275_vm9, %v251_v29  ;;  %v221_v3 = vpop.permute.xlu0 %220 }
  0xab   :  { %vm172_vm2 = vcmp.eq.s32.totalorder %v156_v31, %v2618_v44  ;;  %389 = vmatprep.mubr.f32.mxu0 %v3337_v6  ;;  %vm231_vm14 = vcmp.eq.s32.totalorder %v221_v3, %v2618_v44 }
  0xac   :  { %v2075_v34 = vsel %vm172_vm2, 1.0, %v3337_v6  ;;  %v2086_v24 = vsel %vm231_vm14, 1.0, %v3337_v6 }
  0xad   :  { %v196_v35 = vadd.f32 %v2075_v34, %v140_v32  ;;  %v2063_v32 = vsel %vm64_vm0, 1.0, %v3337_v6 }
  0xaf   :  { %v252_v36 = vadd.f32 %v2083_v33, %v196_v35  ;;  %v103_v37 = vpop.permute.xlu1 %102  ;;  %v88_v33 = vadd.f32 %v2063_v32, %v2626_v50 }
  0xb0   :  { %vm117_vm4 = vcmp.eq.s32.totalorder %v103_v37, %v2618_v44 }
  0xb1   :  { %2093 = vmatmul.mubr.msk.f32.gmra.mxu0 %vm275_vm9, %v252_v36  ;;  %v2068_v45 = vsel %vm117_vm4, 1.0, %v3337_v6  ;;  %vm2389_vm4 = vmmov 0  }
  0xb2   :  { %395 = vmatprep.mubr.f32.mxu0 %v3337_v6  ;;  %v141_v47 = vadd.f32 %v2068_v45, %v85_v40 }
  0xb4   :  { %v50_v38 = vpop.permute.xlu1 %49 }
  0xb5   :  { %vm62_vm7 = vcmp.eq.s32.totalorder %v50_v38, %v2618_v44 }
  0xb6   :  { %v2061_v53 = vsel %vm62_vm7, 1.0, %v3337_v6 }
  0xb7   :  { %v86_v56 = vadd.f32 %v2061_v53, %v2626_v50 }
  0xb9   :  { %v159_v43 = vpop.permute.xlu1 %158  ;;  %v142_v61 = vadd.f32 %v2069_v58, %v86_v56 }
  0xba   :  { %vm173_vm5 = vcmp.eq.s32.totalorder %v159_v43, %v2618_v44 }
  0xbb   :  { %v2076_v46 = vsel %vm173_vm5, 1.0, %v3337_v6  ;;  %v198_v1 = vadd.f32 %v2077_v63, %v142_v61  ;;  %vm1904_vm5 = vcmask 523264  }
  0xbc   :  { %v197_v49 = vadd.f32 %v2076_v46, %v141_v47 }
  0xbe   :  { %v215_v48 = vpop.permute.xlu1 %214 }
  0xbf   :  { %vm229_vm6 = vcmp.eq.s32.totalorder %v215_v48, %v2618_v44 }
  0xc0   :  { %v2084_v41 = vsel %vm229_vm6, 1.0, %v3337_v6 }
  0xc1   :  { %v253_v51 = vadd.f32 %v2084_v41, %v197_v49 }
  0xc3   :  { %v53_v54 = vpop.permute.xlu1 %52  ;;  %2094 = vmatmul.mubr.msk.f32.gmra.mxu0 %vm275_vm9, %v253_v51 }
  0xc4   :  { %401 = vmatprep.mubr.f32.mxu0 %v3337_v6  ;;  %vm63_vm11 = vcmp.eq.s32.totalorder %v53_v54, %v2618_v44 }
  0xc5   :  { %v2062_v2 = vsel %vm63_vm11, 1.0, %v3337_v6 }
  0xc6   :  { %v87_v20 = vadd.f32 %v2062_v2, %v2626_v50 }
  0xc8   :  { %v109_v59 = vpop.permute.xlu1 %108 }
  0xc9   :  { %vm119_vm12 = vcmp.eq.s32.totalorder %v109_v59, %v2618_v44 }
  0xca   :  { %v2070_v15 = vsel %vm119_vm12, 1.0, %v3337_v6 }
  0xcb   :  { %v143_v22 = vadd.f32 %v2070_v15, %v87_v20  ;;  %v420_v20 = vld [vmem:[%s3334_s1] sm:$0xff] }
  0xcd   :  { %v218_v0 = vpop.permute.xlu1 %217 }
  0xce   :  { %vm230_vm13 = vcmp.eq.s32.totalorder %v218_v0, %v2618_v44  ;;  %v520_v9 = vpop.f32.mrf.mxu1 }
  0xcf   :  { %v2085_v11 = vsel %vm230_vm13, 1.0, %v3337_v6  ;;  %v521_v13 = vadd.f32 %v520_v9, %v2696_v62 }
  0xd0   :  { %v254_v17 = vadd.f32 %v2085_v11, %v198_v1  ;;  %v522_v18 = vpop.f32.mrf.mxu1 }
  0xd1   :  { %538 = vrot.lane.b32.xlu1 %v521_v13, %s2386_s11 }
  0xd2   :  { %v165_v21 = vpop.permute.xlu1 %164  ;;  %2095 = vmatmul.mubr.msk.f32.gmra.mxu0 %vm275_vm9, %v254_v17  ;;  %v525_v27 = vpop.f32.mrf.mxu1 }
  0xd3   :  { %vm175_vm15 = vcmp.eq.s32.totalorder %v165_v21, %v2618_v44  ;;  %407 = vmatprep.mubr.f32.mxu0 %v3337_v6  ;;  %v526_v2 = vadd.f32 %v525_v27, %v2696_v62 }
  0xd4   :  { %v2078_v23 = vsel %vm175_vm15, 1.0, %v3337_v6  ;;  %v527_v30 = vpop.f32.mrf.mxu1 }
  0xd5   :  { %v199_v26 = vadd.f32 %v2078_v23, %v143_v22  ;;  %v2718_v31 = vadd.f32 %v527_v30, %v2714_v25 }
  0xd7   :  { %v255_v28 = vadd.f32 %v2086_v24, %v199_v26  ;;  %v112_v29 = vpop.permute.xlu1 %111  ;;  %571 = vrot.lane.b32.xlu0 %v2718_v31, %s2386_s11 }
  0xd8   :  { %vm120_vm1 = vcmp.eq.s32.totalorder %v112_v29, %v2618_v44  ;;  %v595_v29 = vsub.f32 1.0, %v420_v20 }
  0xd9   :  { %2096 = vmatmul.mubr.msk.f32.gmra.mxu0 %vm275_vm9, %v255_v28  ;;  %v2071_v35 = vsel %vm120_vm1, 1.0, %v3337_v6 }
  0xda   :  { %413 = vmatprep.mubr.f32.mxu0 %v3337_v6  ;;  %v144_v37 = vadd.f32 %v2071_v35, %v88_v33 }
  0xdc   :  { %v168_v34 = vpop.permute.xlu1 %167 }
  0xdd   :  { %vm176_vm2 = vcmp.eq.s32.totalorder %v168_v34, %v2618_v44 }
  0xde   :  { %v2079_v36 = vsel %vm176_vm2, 1.0, %v3337_v6 }
  0xdf   :  { %v200_v39 = vadd.f32 %v2079_v36, %v144_v37 }
  0xe1   :  { %v224_v38 = vpop.permute.xlu1 %223 }
  0xe2   :  { %vm232_vm3 = vcmp.eq.s32.totalorder %v224_v38, %v2618_v44  ;;  %v427_v44 = vld [vmem:[%s3334_s1 + $0x38] sm:$0xff] }
  0xe3   :  { %v2087_v40 = vsel %vm232_vm3, 1.0, %v3337_v6  ;;  %v609_v52 = vsub.f32 1.0, %v427_v44 }
  0xe4   :  { %v256_v43 = vadd.f32 %v2087_v40, %v200_v39 }
  0xe6   :  { %2097 = vmatmul.mubr.msk.f32.gmra.mxu0 %vm275_vm9, %v256_v43  ;;  %vm450_vm9 = vcmask 261120  }
 0x143   :  { %v539_v49 = vpop.permute.xlu1 %538 }
 0x149   :  { %v572_v18 = vpop.permute.xlu0 %571 }
 0x158   :  { %v2733_v45 = vpop.f32.mrf.mxu0 }
 0x159   :  { %v530_v50 = vadd.f32 %v521_v13, %v2733_v45 }
 0x15a   :  { %v2743_v53 = vpop.f32.mrf.mxu0 }
 0x15b   :  { %v2099_v46 = vmul.f32 -1.442695, %v530_v50 }
 0x15c   :  { %v2745_v54 = vpop.f32.mrf.mxu0 }
 0x15d   :  { %2245 = vpow2.f32 %v2099_v46 }
 0x15e   :  { %v2747_v55 = vpop.f32.mrf.mxu0 }
 0x16a   :  { %v2246_v47 = vpop.eup %2245  ;;  %v2749_v56 = vpop.f32.mrf.mxu0 }
 0x16b   :  { %v534_v48 = vadd.f32 1.0, %v2246_v47 }
 0x16c   :  { %v2751_v57 = vpop.f32.mrf.mxu0 }
 0x16d   :  { %2247 = vrcp.f32 %v534_v48 }
 0x171   :  { %v2753_v58 = vpop.f32.mrf.mxu0 }
 0x173   :  { %v2755_v42 = vpop.f32.mrf.mxu0 }
 0x17a   :  { %v2736_v41 = vpop.eup %2247 }
 0x17b   :  { %v541_v51 = vmul.f32 %v2736_v41, %v539_v49 }
 0x17d   :  { %543 = vrot.lane.b32.xlu1 %v541_v51, %s2386_s11 }
 0x181   :  { %612 = vperm.xlu1 %2244, %v609_v52   ;;  %v554_v52 = vmul.f32 0.0, %v2736_v41 }
 0x183   :  { %v2757_v59 = vpop.f32.mrf.mxu0 }
 0x185   :  { %v2759_v60 = vpop.f32.mrf.mxu0 }
 0x192   :  { %v2761_v61 = vpop.f32.mrf.mxu0 }
 0x194   :  { %v2763_v63 = vpop.f32.mrf.mxu0 }
 0x199   :  { %v2765_v0 = vpop.f32.mrf.mxu0 }
 0x19b   :  { %v2767_v1 = vpop.f32.mrf.mxu0 }
 0x1a6   :  { %v2770_v3 = vpop.f32.mrf.mxu0 }
 0x1a7   :  { %v556_v9 = vadd.f32 %v526_v2, %v2770_v3 }
 0x1a8   :  { %v417_v24 = vpop.f32.mrf.mxu0 }
 0x1a9   :  { %v2100_v11 = vmul.f32 -1.442695, %v556_v9  ;;  %v563_v30 = vadd.f32 %v2718_v31, %v417_v24  ;;  %v548_v31 = vsub.f32 1.0, %v2736_v41 }
 0x1ab   :  { %2249 = vpow2.f32 %v2100_v11  ;;  %v2101_v32 = vmul.f32 -1.442695, %v563_v30  ;;  %v421_v30 = vld [vmem:[%s3334_s1 + $0x8] sm:$0xff] }
 0x1b8   :  { %v2250_v13 = vpop.eup %2249 }
 0x1b9   :  { %v560_v15 = vadd.f32 1.0, %v2250_v13 }
 0x1bb   :  { %2251 = vrcp.f32 %v560_v15 }
 0x1c8   :  { %v2252_v17 = vpop.eup %2251 }
 0x1c9   :  { %v574_v19 = vmul.f32 %v2252_v17, %v572_v18 }
 0x1cb   :  { %576 = vrot.lane.b32.xlu0 %v574_v19, %s2386_s11 }
 0x1cf   :  { %605 = vperm.xlu0 %2243, %v427_v44  }
 0x1d3   :  { %591 = vperm.xlu0 %2243, %v420_v20   ;;  %v426_v20 = vld [vmem:[%s3334_s1 + $0x30] sm:$0xff] }
 0x1ef   :  { %v544_v21 = vpop.permute.xlu1 %543 }
 0x1f0   :  { %v546_v22 = vadd.f32 %v544_v21, %v2733_v45 }
 0x1f2   :  { %2253 = vtanh.f32 %v546_v22 }
 0x1fc   :  { %v2783_v36 = vpop.permute.xlu1 %612 }
 0x1fd   :  { %v615_v48 = vmul.f32 0.0, %v2783_v36 }
 0x1ff   :  { %v2254_v23 = vpop.eup %2253 }
 0x200   :  { %550 = vrot.lane.b32.xlu0 %v2254_v23, %s2387_s16  ;;  %v786_v23 = vsub.f32 1.0, %v426_v20 }
 0x23d   :  { %v577_v26 = vpop.permute.xlu0 %576 }
 0x23e   :  { %v579_v27 = vadd.f32 %v577_v26, %v417_v24 }
 0x240   :  { %2255 = vtanh.f32 %v579_v27 }
 0x241   :  { %2257 = vpow2.f32 %v2101_v32 }
 0x24a   :  { %v2781_v35 = vpop.permute.xlu0 %605 }
 0x24d   :  { %v2256_v28 = vpop.eup %2255 }
 0x24e   :  { %583 = vrot.lane.b32.xlu1 %v2256_v28, %s2387_s16  ;;  %v2258_v33 = vpop.eup %2257  ;;  %v2785_v38 = vpop.permute.xlu0 %591 }
 0x24f   :  { %v567_v34 = vadd.f32 1.0, %v2258_v33  ;;  %v772_v33 = vsub.f32 1.0, %v421_v30 }
 0x251   :  { %2259 = vrcp.f32 %v567_v34 }
 0x252   :  { %598 = vperm.xlu1 %2244, %v595_v29  }
 0x25e   :  { %v2260_v37 = vpop.eup %2259 }
 0x25f   :  { %v581_v39 = vsub.f32 1.0, %v2260_v37  ;;  %v587_v43 = vmul.f32 0.0, %v2260_v37 }
 0x272   :  { %v551_v46 = vpop.permute.xlu0 %550 }
 0x273   :  { %v553_v51 = vmul.f32 %v551_v46, %v548_v31 }
 0x275   :  { %v2795_v2 = vadd.f32 %v554_v52, %v553_v51 }
 0x277   :  { %v594_v11 = vmul.f32 %v2785_v38, %v2795_v2 }
 0x2c0   :  { %v584_v40 = vpop.permute.xlu1 %583 }
 0x2c1   :  { %v586_v50 = vmul.f32 %v584_v40, %v581_v39 }
 0x2c3   :  { %v2787_v47 = vadd.f32 %v587_v43, %v586_v50 }
 0x2c5   :  { %v608_v49 = vmul.f32 %v2781_v35, %v2787_v47 }
 0x2c7   :  { %v616_v44 = vadd.f32 %v615_v48, %v608_v49 }
 0x2c9   :  { %618 = vrot.lane.b32.xlu1 %v616_v44, %s2388_s17 }
 0x2cd   :  { %v2797_v9 = vpop.permute.xlu1 %598 }
 0x2ce   :  { %v601_v13 = vmul.f32 0.0, %v2797_v9 }
 0x2d0   :  { %v2802_v15 = vadd.f32 %v601_v13, %v594_v11 }
 0x2d2   :  { %622 = vrot.lane.b32.xlu0 %v2802_v15, %s2387_s16 }
 0x33b   :  { %v619_v17 = vpop.permute.xlu1 %618 }
 0x33c   :  { %624 = vrot.lane.b32.xlu1 %v619_v17, %s2387_s16 }
 0x344   :  { %v623_v41 = vpop.permute.xlu0 %622 }
 0x345   :  { %2102 = vmatmul.mubr.msk.f32.vlgmr.msra.gmra.mxu1 %vm450_vm9, %v623_v41 }
 0x346   :  { %699 = vmatprep.mubr.f32.mxu1 %v3337_v6  ;;  %836 = vmatpush1.msra.mxu1 %v2444_v5 }
 0x347   :  { %837 = vmatprep.subr.mxu1 %v2452_v7 }
 0x348   :  { %838 = vmatpush1.msra.mxu1 %v2458_v8 }
 0x349   :  { %839 = vmatprep.subr.mxu1 %v2465_v10 }
 0x34a   :  { %840 = vmatpush1.msra.mxu1 %v2474_v12 }
 0x34b   :  { %841 = vmatprep.subr.mxu1 %v2484_v14 }
 0x34c   :  { %842 = vmatpush1.msra.mxu1 %v2491_v16 }
 0x34d   :  { %1016 = vmatprep.subr.mxu1 %v2439_v4 }
 0x3ae   :  { %v625_v18 = vpop.permute.xlu1 %624 }
 0x3af   :  { %2103 = vmatmul.mubr.msk.f32.gmra.mxu1 %vm450_vm9, %v625_v18 }
 0x3b0   :  { %875 = vmatprep.mubr.f32.mxu1 %v3337_v6 }
 0x405   :  { %v696_v19 = vpop.f32.mrf.mxu1 }
 0x406   :  { %v697_v21 = vadd.f32 %v696_v19, %v2696_v62 }
 0x407   :  { %v698_v22 = vpop.f32.mrf.mxu1 }
 0x408   :  { %714 = vrot.lane.b32.xlu1 %v697_v21, %s2386_s11  ;;  %v706_v39 = vadd.f32 %v697_v21, %v2745_v54 }
 0x40a   :  { %v2104_v43 = vmul.f32 -1.442695, %v706_v39 }
 0x40c   :  { %789 = vperm.xlu1 %2244, %v786_v23  }
 0x410   :  { %782 = vperm.xlu1 %2244, %v426_v20  }
 0x46f   :  { %v701_v24 = vpop.f32.mrf.mxu1 }
 0x470   :  { %v702_v34 = vadd.f32 %v701_v24, %v2696_v62 }
 0x471   :  { %v703_v26 = vpop.f32.mrf.mxu1 }
 0x472   :  { %v704_v27 = vadd.f32 %v703_v26, %v2714_v25  ;;  %v732_v37 = vadd.f32 %v702_v34, %v2765_v0 }
 0x474   :  { %747 = vrot.lane.b32.xlu0 %v704_v27, %s2386_s11  ;;  %v2105_v40 = vmul.f32 -1.442695, %v732_v37  ;;  %v739_v22 = vadd.f32 %v704_v27, %v2767_v1 }
 0x476   :  { %2261 = vpow2.f32 %v2105_v40  ;;  %v2106_v23 = vmul.f32 -1.442695, %v739_v22 }
 0x477   :  { %2263 = vpow2.f32 %v2104_v43 }
 0x47a   :  { %v715_v28 = vpop.permute.xlu1 %714 }
 0x483   :  { %v2262_v50 = vpop.eup %2261 }
 0x484   :  { %v736_v46 = vadd.f32 1.0, %v2262_v50  ;;  %v2264_v31 = vpop.eup %2263 }
 0x485   :  { %v710_v48 = vadd.f32 1.0, %v2264_v31 }
 0x486   :  { %2265 = vrcp.f32 %v736_v46 }
 0x487   :  { %v2826_v29 = vpop.permute.xlu1 %789  ;;  %2267 = vrcp.f32 %v710_v48 }
 0x488   :  { %v792_v32 = vmul.f32 %v2826_v29, %v619_v17 }
 0x48a   :  { %794 = vrot.lane.b32.xlu1 %v792_v32, %s2387_s16 }
 0x48b   :  { %v2843_v39 = vpop.permute.xlu1 %782 }
 0x48e   :  { %775 = vperm.xlu1 %2244, %v772_v33  }
 0x493   :  { %v2266_v49 = vpop.eup %2265 }
 0x494   :  { %v2268_v52 = vpop.eup %2267 }
 0x495   :  { %v717_v11 = vmul.f32 %v2268_v52, %v715_v28  ;;  %v724_v27 = vsub.f32 1.0, %v2268_v52  ;;  %v730_v31 = vmul.f32 %v2268_v52, %v2802_v15 }
 0x4e6   :  { %v748_v51 = vpop.permute.xlu0 %747 }
 0x4e7   :  { %v750_v44 = vmul.f32 %v2266_v49, %v748_v51 }
 0x4e9   :  { %752 = vrot.lane.b32.xlu0 %v750_v44, %s2386_s11 }
 0x4ed   :  { %719 = vrot.lane.b32.xlu0 %v717_v11, %s2386_s11 }
 0x4fc   :  { %v795_v43 = vpop.permute.xlu1 %794 }
 0x55b   :  { %v753_v13 = vpop.permute.xlu0 %752 }
 0x55c   :  { %v755_v17 = vadd.f32 %v753_v13, %v2767_v1 }
 0x55e   :  { %2269 = vtanh.f32 %v755_v17 }
 0x55f   :  { %v720_v41 = vpop.permute.xlu0 %719 }
 0x560   :  { %v722_v19 = vadd.f32 %v720_v41, %v2745_v54 }
 0x562   :  { %2271 = vtanh.f32 %v722_v19  ;;  %v422_v19 = vld [vmem:[%s3334_s1 + $0x10] sm:$0xff] }
 0x563   :  { %2273 = vpow2.f32 %v2106_v23 }
 0x56b   :  { %v2270_v20 = vpop.eup %2269 }
 0x56c   :  { %759 = vrot.lane.b32.xlu0 %v2270_v20, %s2387_s16 }
 0x56f   :  { %v2272_v21 = vpop.eup %2271 }
 0x570   :  { %768 = vperm.xlu0 %2243, %v421_v30   ;;  %v2274_v24 = vpop.eup %2273 }
 0x571   :  { %v743_v26 = vadd.f32 1.0, %v2274_v24 }
 0x573   :  { %2275 = vrcp.f32 %v743_v26 }
 0x574   :  { %726 = vrot.lane.b32.xlu0 %v2272_v21, %s2387_s16  ;;  %v953_v21 = vsub.f32 1.0, %v422_v19 }
 0x580   :  { %v2276_v28 = vpop.eup %2275 }
 0x581   :  { %v757_v32 = vsub.f32 1.0, %v2276_v28  ;;  %v764_v34 = vmul.f32 %v2276_v28, %v625_v18  ;;  %v2853_v18 = vpop.permute.xlu1 %775 }
 0x582   :  { %v778_v51 = vmul.f32 %v2853_v18, %v2802_v15 }
 0x5de   :  { %v760_v33 = vpop.permute.xlu0 %759 }
 0x5df   :  { %v762_v37 = vmul.f32 %v760_v33, %v757_v32 }
 0x5e1   :  { %v2845_v40 = vadd.f32 %v764_v34, %v762_v37 }
 0x5e3   :  { %v785_v30 = vmul.f32 %v2843_v39, %v2845_v40 }
 0x5e5   :  { %v797_v50 = vadd.f32 %v795_v43, %v785_v30 }
 0x5e7   :  { %799 = vrot.lane.b32.xlu1 %v797_v50, %s2388_s17 }
 0x5eb   :  { %v2850_v1 = vpop.permute.xlu0 %768 }
 0x5ef   :  { %v727_v46 = vpop.permute.xlu0 %726 }
 0x5f0   :  { %v729_v48 = vmul.f32 %v727_v46, %v724_v27 }
 0x5f2   :  { %v2855_v49 = vadd.f32 %v730_v31, %v729_v48 }
 0x5f4   :  { %v771_v44 = vmul.f32 %v2850_v1, %v2855_v49 }
 0x5f6   :  { %v2861_v11 = vadd.f32 %v778_v51, %v771_v44 }
 0x5f8   :  { %803 = vrot.lane.b32.xlu0 %v2861_v11, %s2387_s16 }
 0x659   :  { %v800_v13 = vpop.permute.xlu1 %799 }
 0x65a   :  { %805 = vrot.lane.b32.xlu1 %v800_v13, %s2387_s16 }
 0x66a   :  { %v804_v52 = vpop.permute.xlu0 %803 }
 0x66b   :  { %2107 = vmatmul.mubr.msk.f32.vlgmr.msra.gmra.mxu1 %vm450_vm9, %v804_v52 }
 0x66c   :  { %880 = vmatprep.mubr.f32.mxu1 %v3337_v6  ;;  %1017 = vmatpush1.msra.mxu1 %v2444_v5 }
 0x66d   :  { %1018 = vmatprep.subr.mxu1 %v2452_v7  ;;  %v425_v7 = vld [vmem:[%s3334_s1 + $0x28] sm:$0xff] }
 0x66e   :  { %1019 = vmatpush1.msra.mxu1 %v2458_v8 }
 0x66f   :  { %1020 = vmatprep.subr.mxu1 %v2465_v10 }
 0x670   :  { %1021 = vmatpush1.msra.mxu1 %v2474_v12  ;;  %v967_v12 = vsub.f32 1.0, %v425_v7 }
 0x671   :  { %1022 = vmatprep.subr.mxu1 %v2484_v14 }
 0x672   :  { %1023 = vmatpush1.msra.mxu1 %v2491_v16 }
 0x673   :  { %1197 = vmatprep.subr.mxu1 %v2439_v4 }
 0x6cc   :  { %v806_v15 = vpop.permute.xlu1 %805 }
 0x6cd   :  { %2108 = vmatmul.mubr.msk.f32.gmra.mxu1 %vm450_vm9, %v806_v15 }
 0x6ce   :  { %1056 = vmatprep.mubr.f32.mxu1 %v3337_v6 }
 0x72b   :  { %v877_v5 = vpop.f32.mrf.mxu1 }
 0x72c   :  { %v878_v8 = vadd.f32 %v877_v5, %v2696_v62 }
 0x72d   :  { %v879_v10 = vpop.f32.mrf.mxu1 }
 0x72e   :  { %895 = vrot.lane.b32.xlu1 %v878_v8, %s2386_s11  ;;  %v887_v24 = vadd.f32 %v878_v8, %v2749_v56 }
 0x730   :  { %v2109_v28 = vmul.f32 -1.442695, %v887_v24 }
 0x732   :  { %970 = vperm.xlu1 %2244, %v967_v12  }
 0x736   :  { %963 = vperm.xlu1 %2244, %v425_v7  }
 0x78d   :  { %v882_v14 = vpop.f32.mrf.mxu1 }
 0x78e   :  { %v883_v22 = vadd.f32 %v882_v14, %v2696_v62 }
 0x78f   :  { %v884_v4 = vpop.f32.mrf.mxu1 }
 0x790   :  { %v885_v16 = vadd.f32 %v884_v4, %v2714_v25  ;;  %v913_v23 = vadd.f32 %v883_v22, %v2761_v61 }
 0x792   :  { %928 = vrot.lane.b32.xlu0 %v885_v16, %s2386_s11  ;;  %v2110_v26 = vmul.f32 -1.442695, %v913_v23  ;;  %v920_v5 = vadd.f32 %v885_v16, %v2763_v63 }
 0x794   :  { %2277 = vpow2.f32 %v2110_v26  ;;  %v2111_v7 = vmul.f32 -1.442695, %v920_v5 }
 0x795   :  { %2279 = vpow2.f32 %v2109_v28 }
 0x7a0   :  { %v896_v17 = vpop.permute.xlu1 %895 }
 0x7a1   :  { %v2278_v32 = vpop.eup %2277 }
 0x7a2   :  { %v917_v33 = vadd.f32 1.0, %v2278_v32  ;;  %v2280_v34 = vpop.eup %2279 }
 0x7a3   :  { %v891_v37 = vadd.f32 1.0, %v2280_v34 }
 0x7a4   :  { %2281 = vrcp.f32 %v917_v33 }
 0x7a5   :  { %2283 = vrcp.f32 %v891_v37 }
 0x7ad   :  { %v2885_v41 = vpop.permute.xlu1 %970 }
 0x7ae   :  { %v973_v20 = vmul.f32 %v2885_v41, %v800_v13 }
 0x7b0   :  { %975 = vrot.lane.b32.xlu1 %v973_v20, %s2387_s16 }
 0x7b1   :  { %v2282_v30 = vpop.eup %2281 }
 0x7b2   :  { %v2284_v27 = vpop.eup %2283 }
 0x7b3   :  { %v898_v46 = vmul.f32 %v2284_v27, %v896_v17  ;;  %v905_v16 = vsub.f32 1.0, %v2284_v27  ;;  %v911_v28 = vmul.f32 %v2284_v27, %v2861_v11  ;;  %v2936_v27 = vld [vmem:[%s3332_s3 + $0x28] sm:$0xff] }
 0x7b4   :  { %956 = vperm.xlu1 %2244, %v953_v21   ;;  %v2902_v21 = vpop.permute.xlu1 %963 }
 0x804   :  { %v929_v43 = vpop.permute.xlu0 %928 }
 0x805   :  { %v931_v50 = vmul.f32 %v2282_v30, %v929_v43 }
 0x807   :  { %933 = vrot.lane.b32.xlu0 %v931_v50, %s2386_s11 }
 0x80b   :  { %900 = vrot.lane.b32.xlu0 %v898_v46, %s2386_s11  ;;  %v2942_v46 = vld [vmem:[%s3332_s3 + $0x20] sm:$0xff] }
 0x822   :  { %v976_v23 = vpop.permute.xlu1 %975 }
 0x879   :  { %v934_v31 = vpop.permute.xlu0 %933 }
 0x87a   :  { %v936_v48 = vadd.f32 %v934_v31, %v2763_v63  ;;  %v2948_v31 = vld [vmem:[%s3332_s3 + $0x18] sm:$0xff] }
 0x87c   :  { %2285 = vtanh.f32 %v936_v48  ;;  %v2954_v48 = vld [vmem:[%s3332_s3 + $0x10] sm:$0xff] }
 0x87d   :  { %v901_v51 = vpop.permute.xlu0 %900 }
 0x87e   :  { %v903_v44 = vadd.f32 %v901_v51, %v2749_v56  ;;  %v2960_v51 = vld [vmem:[%s3332_s3 + $0x8] sm:$0xff] }
 0x880   :  { %2287 = vtanh.f32 %v903_v44  ;;  %v2966_v44 = vld [vmem:[%s3332_s3] sm:$0xff] }
 0x881   :  { %2289 = vpow2.f32 %v2111_v7  ;;  %v424_v7 = vld [vmem:[%s3334_s1 + $0x20] sm:$0xff] }
 0x889   :  { %v2286_v13 = vpop.eup %2285 }
 0x88a   :  { %940 = vrot.lane.b32.xlu0 %v2286_v13, %s2387_s16  ;;  %v2972_v13 = vld [vmem:[%s3332_s3 + $0x38] sm:$0xff] }
 0x88d   :  { %v2288_v52 = vpop.eup %2287 }
 0x88e   :  { %949 = vperm.xlu0 %2243, %v422_v19   ;;  %v2290_v8 = vpop.eup %2289 }
 0x88f   :  { %v924_v10 = vadd.f32 1.0, %v2290_v8 }
 0x891   :  { %2291 = vrcp.f32 %v924_v10 }
 0x892   :  { %907 = vrot.lane.b32.xlu0 %v2288_v52, %s2387_s16 }
 0x89e   :  { %v2292_v12 = vpop.eup %2291 }
 0x89f   :  { %v938_v14 = vsub.f32 1.0, %v2292_v12  ;;  %v945_v17 = vmul.f32 %v2292_v12, %v806_v15  ;;  %v2912_v15 = vpop.permute.xlu1 %956  ;;  %v1148_v12 = vsub.f32 1.0, %v424_v7 }
 0x8a0   :  { %v959_v34 = vmul.f32 %v2912_v15, %v2861_v11  ;;  %v2930_v11 = vld [vmem:[%s3332_s3 + $0x30] sm:$0xff] }
 0x8fc   :  { %v941_v4 = vpop.permute.xlu0 %940 }
 0x8fd   :  { %v943_v20 = vmul.f32 %v941_v4, %v938_v14 }
 0x8ff   :  { %v2904_v22 = vadd.f32 %v945_v17, %v943_v20 }
 0x901   :  { %v966_v19 = vmul.f32 %v2902_v21, %v2904_v22 }
 0x903   :  { %v978_v24 = vadd.f32 %v976_v23, %v966_v19  ;;  %v423_v23 = vld [vmem:[%s3334_s1 + $0x18] sm:$0xff] }
 0x905   :  { %980 = vrot.lane.b32.xlu1 %v978_v24, %s2388_s17 }
 0x909   :  { %v2909_v63 = vpop.permute.xlu0 %949 }
 0x90d   :  { %v908_v26 = vpop.permute.xlu0 %907 }
 0x90e   :  { %v910_v32 = vmul.f32 %v908_v26, %v905_v16  ;;  %v1134_v16 = vsub.f32 1.0, %v423_v23 }
 0x910   :  { %v2914_v33 = vadd.f32 %v911_v28, %v910_v32 }
 0x912   :  { %v952_v37 = vmul.f32 %v2909_v63, %v2914_v33 }
 0x914   :  { %v2920_v30 = vadd.f32 %v959_v34, %v952_v37 }
 0x916   :  { %984 = vrot.lane.b32.xlu0 %v2920_v30, %s2387_s16 }
 0x977   :  { %v981_v43 = vpop.permute.xlu1 %980 }
 0x978   :  { %986 = vrot.lane.b32.xlu1 %v981_v43, %s2387_s16 }
 0x988   :  { %v985_v50 = vpop.permute.xlu0 %984 }
 0x989   :  { %2112 = vmatmul.mubr.msk.f32.vlgmr.msra.gmra.mxu1 %vm450_vm9, %v985_v50 }
 0x98a   :  { %1061 = vmatprep.mubr.f32.mxu1 %v3337_v6  ;;  %1198 = vmatpush1.msra.mxu1 %v2930_v11 }
 0x98b   :  { %1199 = vmatprep.subr.mxu1 %v2936_v27 }
 0x98c   :  { %1200 = vmatpush1.msra.mxu1 %v2942_v46 }
 0x98d   :  { %1201 = vmatprep.subr.mxu1 %v2948_v31 }
 0x98e   :  { %1202 = vmatpush1.msra.mxu1 %v2954_v48 }
 0x98f   :  { %1203 = vmatprep.subr.mxu1 %v2960_v51 }
 0x990   :  { %1204 = vmatpush1.msra.mxu1 %v2966_v44 }
 0x991   :  { %1356 = vmatprep.subr.mxu1 %v2972_v13 }
 0x9ea   :  { %v987_v52 = vpop.permute.xlu1 %986 }
 0x9eb   :  { %2113 = vmatmul.mubr.msk.f32.gmra.mxu1 %vm450_vm9, %v987_v52 }
 0x9ec   :  { %1237 = vmatprep.mubr.f32.mxu1 %v3337_v6 }
 0xa49   :  { %v1058_v5 = vpop.f32.mrf.mxu1 }
 0xa4a   :  { %v1059_v8 = vadd.f32 %v1058_v5, %v2696_v62 }
 0xa4b   :  { %v1060_v10 = vpop.f32.mrf.mxu1 }
 0xa4c   :  { %1076 = vrot.lane.b32.xlu1 %v1059_v8, %s2386_s11  ;;  %v1068_v32 = vadd.f32 %v1059_v8, %v2753_v58 }
 0xa4e   :  { %v2114_v37 = vmul.f32 -1.442695, %v1068_v32 }
 0xa50   :  { %1151 = vperm.xlu1 %2244, %v1148_v12  }
 0xa54   :  { %1144 = vperm.xlu1 %2244, %v424_v7  }
 0xaab   :  { %v1063_v14 = vpop.f32.mrf.mxu1 }
 0xaac   :  { %v1064_v26 = vadd.f32 %v1063_v14, %v2696_v62 }
 0xaad   :  { %v1065_v4 = vpop.f32.mrf.mxu1 }
 0xaae   :  { %v1066_v17 = vadd.f32 %v1065_v4, %v2714_v25  ;;  %v1094_v28 = vadd.f32 %v1064_v26, %v2757_v59 }
 0xab0   :  { %1109 = vrot.lane.b32.xlu0 %v1066_v17, %s2386_s11  ;;  %v2115_v34 = vmul.f32 -1.442695, %v1094_v28 }
 0xab2   :  { %2293 = vpow2.f32 %v2115_v34 }
 0xab3   :  { %2295 = vpow2.f32 %v2114_v37  ;;  %v1101_v37 = vadd.f32 %v1066_v17, %v2759_v60 }
 0xabe   :  { %v1077_v20 = vpop.permute.xlu1 %1076 }
 0xabf   :  { %v2294_v50 = vpop.eup %2293 }
 0xac0   :  { %v1098_v5 = vadd.f32 1.0, %v2294_v50  ;;  %v2296_v7 = vpop.eup %2295 }
 0xac1   :  { %v1072_v10 = vadd.f32 1.0, %v2296_v7 }
 0xac2   :  { %2297 = vrcp.f32 %v1098_v5 }
 0xac3   :  { %2299 = vrcp.f32 %v1072_v10 }
 0xacb   :  { %v2984_v19 = vpop.permute.xlu1 %1151 }
 0xacc   :  { %v1154_v24 = vmul.f32 %v2984_v19, %v981_v43 }
 0xace   :  { %1156 = vrot.lane.b32.xlu1 %v1154_v24, %s2387_s16 }
 0xacf   :  { %v2298_v43 = vpop.eup %2297 }
 0xad0   :  { %v2300_v14 = vpop.eup %2299 }
 0xad1   :  { %v1079_v24 = vmul.f32 %v2300_v14, %v1077_v20  ;;  %v2116_v20 = vmul.f32 -1.442695, %v1101_v37  ;;  %v1086_v17 = vsub.f32 1.0, %v2300_v14 }
 0xad2   :  { %1137 = vperm.xlu1 %2244, %v1134_v16  }
 0xb22   :  { %v1110_v12 = vpop.permute.xlu0 %1109 }
 0xb23   :  { %v1112_v4 = vmul.f32 %v2298_v43, %v1110_v12 }
 0xb25   :  { %1114 = vrot.lane.b32.xlu0 %v1112_v4, %s2386_s11 }
 0xb29   :  { %1081 = vrot.lane.b32.xlu0 %v1079_v24, %s2386_s11  ;;  %v3001_v24 = vpop.permute.xlu1 %1144 }
 0xb97   :  { %v1115_v8 = vpop.permute.xlu0 %1114 }
 0xb98   :  { %v1117_v16 = vadd.f32 %v1115_v8, %v2759_v60 }
 0xb9a   :  { %2301 = vtanh.f32 %v1117_v16  ;;  %v1157_v16 = vpop.permute.xlu1 %1156 }
 0xb9b   :  { %v1082_v26 = vpop.permute.xlu0 %1081 }
 0xb9c   :  { %v1084_v28 = vadd.f32 %v1082_v26, %v2753_v58 }
 0xb9e   :  { %2303 = vtanh.f32 %v1084_v28 }
 0xb9f   :  { %2305 = vpow2.f32 %v2116_v20 }
 0xba7   :  { %v2302_v32 = vpop.eup %2301 }
 0xba8   :  { %1121 = vrot.lane.b32.xlu0 %v2302_v32, %s2387_s16  ;;  %v1092_v32 = vmul.f32 %v2300_v14, %v2920_v30 }
 0xbab   :  { %v2304_v34 = vpop.eup %2303 }
 0xbac   :  { %1130 = vperm.xlu0 %2243, %v423_v23   ;;  %v2306_v50 = vpop.eup %2305 }
 0xbad   :  { %v1105_v5 = vadd.f32 1.0, %v2306_v50 }
 0xbaf   :  { %2307 = vrcp.f32 %v1105_v5 }
 0xbb0   :  { %1088 = vrot.lane.b32.xlu0 %v2304_v34, %s2387_s16 }
 0xbbc   :  { %v2308_v7 = vpop.eup %2307 }
 0xbbd   :  { %v1119_v10 = vsub.f32 1.0, %v2308_v7  ;;  %v1126_v12 = vmul.f32 %v2308_v7, %v987_v52  ;;  %v1138_v52 = vpop.permute.xlu1 %1137 }
 0xbbe   :  { %v1140_v20 = vmul.f32 %v1138_v52, %v2920_v30 }
 0xc1a   :  { %v1122_v43 = vpop.permute.xlu0 %1121 }
 0xc1b   :  { %v1124_v4 = vmul.f32 %v1122_v43, %v1119_v10 }
 0xc1d   :  { %v3003_v8 = vadd.f32 %v1126_v12, %v1124_v4 }
 0xc1f   :  { %v1147_v23 = vmul.f32 %v3001_v24, %v3003_v8 }
 0xc21   :  { %v1159_v26 = vadd.f32 %v1157_v16, %v1147_v23 }
 0xc23   :  { %1161 = vrot.lane.b32.xlu1 %v1159_v26, %s2388_s17 }
 0xc27   :  { %v3008_v60 = vpop.permute.xlu0 %1130 }
 0xc2b   :  { %v1089_v28 = vpop.permute.xlu0 %1088 }
 0xc2c   :  { %v1091_v34 = vmul.f32 %v1089_v28, %v1086_v17 }
 0xc2e   :  { %v3011_v37 = vadd.f32 %v1092_v32, %v1091_v34 }
 0xc30   :  { %v1133_v50 = vmul.f32 %v3008_v60, %v3011_v37 }
 0xc32   :  { %v3016_v5 = vadd.f32 %v1140_v20, %v1133_v50 }
 0xc34   :  { %1165 = vrot.lane.b32.xlu0 %v3016_v5, %s2387_s16 }
 0xc95   :  { %v1162_v7 = vpop.permute.xlu1 %1161 }
 0xc96   :  { %1167 = vrot.lane.b32.xlu1 %v1162_v7, %s2387_s16 }
 0xca6   :  { %v1166_v10 = vpop.permute.xlu0 %1165 }
 0xca7   :  { %2117 = vmatmul.mubr.msk.f32.vlgmr.msra.gmra.mxu1 %vm450_vm9, %v1166_v10  ;;  %v1313_v10 = vmul.f32 %v1162_v7, %v1138_v52 }
 0xca8   :  { %1242 = vmatprep.mubr.f32.mxu1 %v3337_v6  ;;  %1357 = vmatpush1.msra.mxu1 %v2930_v11 }
 0xca9   :  { %1358 = vmatprep.subr.mxu1 %v2936_v27 }
 0xcaa   :  { %1359 = vmatpush1.msra.mxu1 %v2942_v46 }
 0xcab   :  { %1360 = vmatprep.subr.mxu1 %v2948_v31 }
 0xcac   :  { %1361 = vmatpush1.msra.mxu1 %v2954_v48 }
 0xcad   :  { %1362 = vmatprep.subr.mxu1 %v2960_v51 }
 0xcae   :  { %1363 = vmatpush1.msra.mxu1 %v2966_v44 }
 0xcaf   :  { %1515 = vmatprep.subr.mxu1 %v2972_v13 }
 0xd08   :  { %v1168_v30 = vpop.permute.xlu1 %1167 }
 0xd09   :  { %2118 = vmatmul.mubr.msk.f32.gmra.mxu1 %vm450_vm9, %v1168_v30 }
 0xd0a   :  { %1396 = vmatprep.mubr.f32.mxu1 %v3337_v6 }
 0xd67   :  { %v1239_v14 = vpop.f32.mrf.mxu1 }
 0xd68   :  { %v1240_v43 = vadd.f32 %v1239_v14, %v2696_v62 }
 0xd69   :  { %v1241_v12 = vpop.f32.mrf.mxu1 }
 0xd6a   :  { %1257 = vrot.lane.b32.xlu1 %v1240_v43, %s2386_s11  ;;  %v1249_v4 = vadd.f32 %v1240_v43, %v2757_v59 }
 0xd6c   :  { %v2119_v23 = vmul.f32 -1.442695, %v1249_v4 }
 0xd6e   :  { %2309 = vpow2.f32 %v2119_v23 }
 0xd7b   :  { %v2310_v16 = vpop.eup %2309 }
 0xd7c   :  { %v1253_v17 = vadd.f32 1.0, %v2310_v16 }
 0xd7e   :  { %2311 = vrcp.f32 %v1253_v17 }
 0xd8b   :  { %v2312_v34 = vpop.eup %2311 }
 0xdc9   :  { %v1244_v26 = vpop.f32.mrf.mxu1 }
 0xdca   :  { %v1245_v14 = vadd.f32 %v1244_v26, %v2696_v62 }
 0xdcb   :  { %v1246_v28 = vpop.f32.mrf.mxu1 }
 0xdcc   :  { %v1247_v32 = vadd.f32 %v1246_v28, %v2714_v25  ;;  %v1275_v43 = vadd.f32 %v1245_v14, %v2753_v58 }
 0xdce   :  { %1290 = vrot.lane.b32.xlu0 %v1247_v32, %s2386_s11  ;;  %v2120_v12 = vmul.f32 -1.442695, %v1275_v43 }
 0xdd0   :  { %2313 = vpow2.f32 %v2120_v12 }
 0xddc   :  { %v1258_v20 = vpop.permute.xlu1 %1257 }
 0xddd   :  { %v1260_v50 = vmul.f32 %v2312_v34, %v1258_v20  ;;  %v2314_v4 = vpop.eup %2313 }
 0xdde   :  { %v1279_v23 = vadd.f32 1.0, %v2314_v4 }
 0xddf   :  { %1262 = vrot.lane.b32.xlu1 %v1260_v50, %s2386_s11  ;;  %v1282_v50 = vadd.f32 %v1247_v32, %v2755_v42 }
 0xde0   :  { %2315 = vrcp.f32 %v1279_v23 }
 0xde3   :  { %1315 = vrot.lane.b32.xlu1 %v1313_v10, %s2387_s16  ;;  %v2121_v10 = vmul.f32 -1.442695, %v1282_v50 }
 0xded   :  { %v2316_v16 = vpop.eup %2315 }
 0xe40   :  { %v1291_v28 = vpop.permute.xlu0 %1290 }
 0xe41   :  { %v1293_v17 = vmul.f32 %v2316_v16, %v1291_v28  ;;  %v1267_v28 = vsub.f32 1.0, %v2312_v34 }
 0xe43   :  { %1295 = vrot.lane.b32.xlu0 %v1293_v17, %s2386_s11 }
 0xe51   :  { %v1263_v20 = vpop.permute.xlu1 %1262 }
 0xe52   :  { %v1265_v7 = vadd.f32 %v1263_v20, %v2757_v59 }
 0xe55   :  { %v1316_v32 = vpop.permute.xlu1 %1315 }
 0xeb5   :  { %v1296_v6 = vpop.permute.xlu0 %1295 }
 0xeb6   :  { %v1298_v52 = vadd.f32 %v1296_v6, %v2755_v42 }
 0xeb8   :  { %2317 = vtanh.f32 %v1298_v52  ;;  %v1273_v52 = vmul.f32 %v2312_v34, %v3016_v5 }
 0xeb9   :  { %2319 = vtanh.f32 %v1265_v7 }
 0xeba   :  { %2321 = vpow2.f32 %v2121_v10 }
 0xec5   :  { %v2318_v26 = vpop.eup %2317 }
 0xec6   :  { %1302 = vrot.lane.b32.xlu0 %v2318_v26, %s2387_s16  ;;  %v2320_v58 = vpop.eup %2319 }
 0xec7   :  { %v2322_v14 = vpop.eup %2321 }
 0xec8   :  { %v1286_v43 = vadd.f32 1.0, %v2322_v14  ;;  %v3339_v14 = vmov 0.0  }
 0xec9   :  { %2180 = vmatprep.mubr.msk.f32.mxu0 %vm2389_vm4, %v3339_v14 }
 0xeca   :  { %1269 = vrot.lane.b32.xlu0 %v2320_v58, %s2387_s16  ;;  %2323 = vrcp.f32 %v1286_v43 }
 0xed7   :  { %v2324_v12 = vpop.eup %2323 }
 0xed8   :  { %v1300_v4 = vsub.f32 1.0, %v2324_v12  ;;  %v1307_v23 = vmul.f32 %v2324_v12, %v1168_v30  ;;  %v1310_v30 = vmul.f32 %v2984_v19, %v3016_v5 }
 0xf38   :  { %v1303_v6 = vpop.permute.xlu0 %1302 }
 0xf39   :  { %v1305_v59 = vmul.f32 %v1303_v6, %v1300_v4 }
 0xf3b   :  { %v3048_v16 = vadd.f32 %v1307_v23, %v1305_v59 }
 0xf3c   :  { %v1270_v17 = vpop.permute.xlu0 %1269 }
 0xf3d   :  { %v1312_v20 = vmul.f32 %v3048_v16, %v3008_v60  ;;  %v1272_v42 = vmul.f32 %v1270_v17, %v1267_v28 }
 0xf3f   :  { %v1318_v7 = vadd.f32 %v1316_v32, %v1312_v20  ;;  %v3053_v26 = vadd.f32 %v1273_v52, %v1272_v42 }
 0xf41   :  { %v1309_v58 = vmul.f32 %v3053_v26, %v3001_v24  ;;  %1320 = vrot.lane.b32.xlu1 %v1318_v7, %s2388_s17 }
 0xf43   :  { %v3060_v50 = vadd.f32 %v1310_v30, %v1309_v58 }
 0xf45   :  { %1324 = vrot.lane.b32.xlu0 %v3060_v50, %s2387_s16 }
 0xfb3   :  { %v1321_v10 = vpop.permute.xlu1 %1320 }
 0xfb4   :  { %1326 = vrot.lane.b32.xlu1 %v1321_v10, %s2387_s16  ;;  %v1472_v32 = vmul.f32 %v1321_v10, %v2912_v15 }
 0xfb7   :  { %v1325_v34 = vpop.permute.xlu0 %1324 }
 0xfb8   :  { %2122 = vmatmul.mubr.msk.f32.vlgmr.msra.gmra.mxu1 %vm450_vm9, %v1325_v34 }
 0xfb9   :  { %1401 = vmatprep.mubr.f32.mxu1 %v3339_v14  ;;  %1516 = vmatpush1.msra.mxu1 %v2930_v11 }
 0xfba   :  { %1517 = vmatprep.subr.mxu1 %v2936_v27 }
 0xfbb   :  { %1518 = vmatpush1.msra.mxu1 %v2942_v46 }
 0xfbc   :  { %1519 = vmatprep.subr.mxu1 %v2948_v31 }
 0xfbd   :  { %1520 = vmatpush1.msra.mxu1 %v2954_v48 }
 0xfbe   :  { %1521 = vmatprep.subr.mxu1 %v2960_v51 }
 0xfbf   :  { %1522 = vmatpush1.msra.mxu1 %v2966_v44 }
 0xfc0   :  { %1674 = vmatprep.subr.mxu1 %v2972_v13 }
0x1026   :  { %v1327_v19 = vpop.permute.xlu1 %1326 }
0x1027   :  { %2123 = vmatmul.mubr.msk.f32.gmra.mxu1 %vm450_vm9, %v1327_v19 }
0x1028   :  { %1555 = vmatprep.mubr.f32.mxu1 %v3339_v14 }
0x1078   :  { %v1398_v5 = vpop.f32.mrf.mxu1 }
0x1079   :  { %v1399_v43 = vadd.f32 %v1398_v5, %v2696_v62 }
0x107a   :  { %v1400_v12 = vpop.f32.mrf.mxu1 }
0x107b   :  { %1416 = vrot.lane.b32.xlu1 %v1399_v43, %s2386_s11  ;;  %v1408_v4 = vadd.f32 %v1399_v43, %v2761_v61 }
0x107d   :  { %v2124_v6 = vmul.f32 -1.442695, %v1408_v4 }
0x107f   :  { %2325 = vpow2.f32 %v2124_v6 }
0x108c   :  { %v2326_v23 = vpop.eup %2325 }
0x108d   :  { %v1412_v59 = vadd.f32 1.0, %v2326_v23 }
0x108f   :  { %2327 = vrcp.f32 %v1412_v59 }
0x109c   :  { %v2328_v20 = vpop.eup %2327 }
0x10e7   :  { %v1403_v28 = vpop.f32.mrf.mxu1 }
0x10e8   :  { %v1404_v7 = vadd.f32 %v1403_v28, %v2696_v62 }
0x10e9   :  { %v1405_v13 = vpop.f32.mrf.mxu1 }
0x10ea   :  { %v1406_v17 = vadd.f32 %v1405_v13, %v2714_v25  ;;  %v1434_v58 = vadd.f32 %v1404_v7, %v2749_v56 }
0x10ec   :  { %1449 = vrot.lane.b32.xlu0 %v1406_v17, %s2386_s11  ;;  %v2125_v30 = vmul.f32 -1.442695, %v1434_v58  ;;  %v1441_v28 = vadd.f32 %v1406_v17, %v2751_v57 }
0x10ed   :  { %v1417_v52 = vpop.permute.xlu1 %1416 }
0x10ee   :  { %v1419_v42 = vmul.f32 %v2328_v20, %v1417_v52  ;;  %2329 = vpow2.f32 %v2125_v30  ;;  %v2126_v13 = vmul.f32 -1.442695, %v1441_v28 }
0x10f0   :  { %1421 = vrot.lane.b32.xlu1 %v1419_v42, %s2386_s11 }
0x10f4   :  { %1474 = vrot.lane.b32.xlu1 %v1472_v32, %s2387_s16 }
0x10fb   :  { %v2330_v34 = vpop.eup %2329 }
0x10fc   :  { %v1438_v5 = vadd.f32 1.0, %v2330_v34 }
0x10fe   :  { %2331 = vrcp.f32 %v1438_v5  ;;  %v1426_v5 = vsub.f32 1.0, %v2328_v20 }
0x110b   :  { %v2332_v43 = vpop.eup %2331 }
0x115e   :  { %v1450_v12 = vpop.permute.xlu0 %1449 }
0x115f   :  { %v1452_v4 = vmul.f32 %v2332_v43, %v1450_v12 }
0x1161   :  { %1454 = vrot.lane.b32.xlu0 %v1452_v4, %s2386_s11  ;;  %v1432_v4 = vmul.f32 %v2328_v20, %v3060_v50 }
0x1162   :  { %v1422_v6 = vpop.permute.xlu1 %1421 }
0x1163   :  { %v1424_v10 = vadd.f32 %v1422_v6, %v2761_v61 }
0x1166   :  { %v1475_v17 = vpop.permute.xlu1 %1474 }
0x11d3   :  { %v1455_v23 = vpop.permute.xlu0 %1454 }
0x11d4   :  { %v1457_v15 = vadd.f32 %v1455_v23, %v2751_v57 }
0x11d6   :  { %2333 = vtanh.f32 %v1457_v15 }
0x11d7   :  { %2335 = vtanh.f32 %v1424_v10 }
0x11d8   :  { %2337 = vpow2.f32 %v2126_v13 }
0x11e3   :  { %v2334_v59 = vpop.eup %2333 }
0x11e4   :  { %1461 = vrot.lane.b32.xlu0 %v2334_v59, %s2387_s16  ;;  %v2336_v56 = vpop.eup %2335 }
0x11e5   :  { %v2338_v52 = vpop.eup %2337 }
0x11e6   :  { %v1445_v42 = vadd.f32 1.0, %v2338_v52 }
0x11e8   :  { %1428 = vrot.lane.b32.xlu0 %v2336_v56, %s2387_s16  ;;  %2339 = vrcp.f32 %v1445_v42 }
0x11f5   :  { %v2340_v32 = vpop.eup %2339 }
0x11f6   :  { %v1459_v7 = vsub.f32 1.0, %v2340_v32  ;;  %v1466_v30 = vmul.f32 %v2340_v32, %v1327_v19  ;;  %v1469_v19 = vmul.f32 %v3060_v50, %v2885_v41 }
0x1256   :  { %v1462_v58 = vpop.permute.xlu0 %1461 }
0x1257   :  { %v1464_v61 = vmul.f32 %v1462_v58, %v1459_v7 }
0x1259   :  { %v3093_v34 = vadd.f32 %v1466_v30, %v1464_v61 }
0x125a   :  { %v1429_v43 = vpop.permute.xlu0 %1428 }
0x125b   :  { %v1471_v12 = vmul.f32 %v3093_v34, %v2909_v63  ;;  %v1431_v57 = vmul.f32 %v1429_v43, %v1426_v5 }
0x125d   :  { %v1477_v6 = vadd.f32 %v1475_v17, %v1471_v12  ;;  %v3098_v23 = vadd.f32 %v1432_v4, %v1431_v57 }
0x125f   :  { %v1468_v15 = vmul.f32 %v3098_v23, %v2902_v21  ;;  %1479 = vrot.lane.b32.xlu1 %v1477_v6, %s2388_s17 }
0x1261   :  { %v3105_v10 = vadd.f32 %v1469_v19, %v1468_v15 }
0x1263   :  { %1483 = vrot.lane.b32.xlu0 %v3105_v10, %s2387_s16 }
0x12d1   :  { %v1480_v59 = vpop.permute.xlu1 %1479 }
0x12d2   :  { %1485 = vrot.lane.b32.xlu1 %v1480_v59, %s2387_s16  ;;  %v1631_v32 = vmul.f32 %v1480_v59, %v2853_v18 }
0x12d5   :  { %v1484_v20 = vpop.permute.xlu0 %1483 }
0x12d6   :  { %2127 = vmatmul.mubr.msk.f32.vlgmr.msra.gmra.mxu1 %vm450_vm9, %v1484_v20 }
0x12d7   :  { %1560 = vmatprep.mubr.f32.mxu1 %v3339_v14  ;;  %1675 = vmatpush1.msra.mxu1 %v2930_v11 }
0x12d8   :  { %1676 = vmatprep.subr.mxu1 %v2936_v27 }
0x12d9   :  { %1677 = vmatpush1.msra.mxu1 %v2942_v46 }
0x12da   :  { %1678 = vmatprep.subr.mxu1 %v2948_v31 }
0x12db   :  { %1679 = vmatpush1.msra.mxu1 %v2954_v48 }
0x12dc   :  { %1680 = vmatprep.subr.mxu1 %v2960_v51 }
0x12dd   :  { %1681 = vmatpush1.msra.mxu1 %v2966_v44 }
0x1344   :  { %v1486_v41 = vpop.permute.xlu1 %1485 }
0x1345   :  { %2128 = vmatmul.mubr.msk.f32.gmra.mxu1 %vm450_vm9, %v1486_v41 }
0x1346   :  { %1714 = vmatprep.mubr.f32.mxu1 %v3339_v14 }
0x1396   :  { %v1557_v50 = vpop.f32.mrf.mxu1 }
0x1397   :  { %v1558_v11 = vadd.f32 %v1557_v50, %v2696_v62 }
0x1398   :  { %v1559_v56 = vpop.f32.mrf.mxu1 }
0x1399   :  { %1575 = vrot.lane.b32.xlu1 %v1558_v11, %s2386_s11  ;;  %v1567_v27 = vadd.f32 %v1558_v11, %v2765_v0 }
0x139b   :  { %v2129_v46 = vmul.f32 -1.442695, %v1567_v27 }
0x139d   :  { %2341 = vpow2.f32 %v2129_v46 }
0x13aa   :  { %v2342_v31 = vpop.eup %2341 }
0x13ab   :  { %v1571_v48 = vadd.f32 1.0, %v2342_v31 }
0x13ad   :  { %2343 = vrcp.f32 %v1571_v48 }
0x13ba   :  { %v2344_v13 = vpop.eup %2343 }
0x13bb   :  { %v1585_v48 = vsub.f32 1.0, %v2344_v13 }
0x1405   :  { %v1562_v51 = vpop.f32.mrf.mxu1 }
0x1406   :  { %v1563_v7 = vadd.f32 %v1562_v51, %v2696_v62 }
0x1407   :  { %v1564_v44 = vpop.f32.mrf.mxu1 }
0x1408   :  { %v1565_v28 = vadd.f32 %v1564_v44, %v2714_v25  ;;  %v1593_v58 = vadd.f32 %v1563_v7, %v2745_v54 }
0x140a   :  { %1608 = vrot.lane.b32.xlu0 %v1565_v28, %s2386_s11  ;;  %v2130_v30 = vmul.f32 -1.442695, %v1593_v58  ;;  %v1600_v19 = vadd.f32 %v1565_v28, %v2747_v55  ;;  %v1628_v58 = vmul.f32 %v3105_v10, %v2826_v29 }
0x140b   :  { %v1576_v52 = vpop.permute.xlu1 %1575 }
0x140c   :  { %v1578_v42 = vmul.f32 %v2344_v13, %v1576_v52  ;;  %2345 = vpow2.f32 %v2130_v30  ;;  %v2131_v59 = vmul.f32 -1.442695, %v1600_v19  ;;  %v1591_v52 = vmul.f32 %v2344_v13, %v3105_v10 }
0x140e   :  { %1580 = vrot.lane.b32.xlu1 %v1578_v42, %s2386_s11 }
0x1412   :  { %1633 = vrot.lane.b32.xlu1 %v1631_v32, %s2387_s16 }
0x1419   :  { %v2346_v61 = vpop.eup %2345 }
0x141a   :  { %v1597_v5 = vadd.f32 1.0, %v2346_v61 }
0x141c   :  { %2347 = vrcp.f32 %v1597_v5 }
0x1429   :  { %v2348_v43 = vpop.eup %2347 }
0x147c   :  { %v1609_v12 = vpop.permute.xlu0 %1608 }
0x147d   :  { %v1611_v4 = vmul.f32 %v2348_v43, %v1609_v12 }
0x147f   :  { %1613 = vrot.lane.b32.xlu0 %v1611_v4, %s2386_s11 }
0x1480   :  { %v1581_v57 = vpop.permute.xlu1 %1580 }
0x1481   :  { %v1583_v6 = vadd.f32 %v1581_v57, %v2765_v0 }
0x1484   :  { %v1634_v28 = vpop.permute.xlu1 %1633 }
0x14f1   :  { %v1614_v17 = vpop.permute.xlu0 %1613 }
0x14f2   :  { %v1616_v18 = vadd.f32 %v1614_v17, %v2747_v55 }
0x14f4   :  { %2349 = vtanh.f32 %v1616_v18 }
0x14f5   :  { %2351 = vtanh.f32 %v1583_v6 }
0x14f6   :  { %2353 = vpow2.f32 %v2131_v59 }
0x1501   :  { %v2350_v15 = vpop.eup %2349 }
0x1502   :  { %1620 = vrot.lane.b32.xlu0 %v2350_v15, %s2387_s16  ;;  %v2352_v54 = vpop.eup %2351 }
0x1503   :  { %v2354_v20 = vpop.eup %2353 }
0x1504   :  { %v1604_v50 = vadd.f32 1.0, %v2354_v20 }
0x1506   :  { %1587 = vrot.lane.b32.xlu0 %v2352_v54, %s2387_s16  ;;  %2355 = vrcp.f32 %v1604_v50 }
0x1513   :  { %v2356_v11 = vpop.eup %2355 }
0x1514   :  { %v1618_v56 = vsub.f32 1.0, %v2356_v11  ;;  %v1625_v46 = vmul.f32 %v2356_v11, %v1486_v41 }
0x1574   :  { %v1621_v27 = vpop.permute.xlu0 %1620 }
0x1575   :  { %v1623_v0 = vmul.f32 %v1621_v27, %v1618_v56 }
0x1577   :  { %v3137_v31 = vadd.f32 %v1625_v46, %v1623_v0 }
0x1578   :  { %v1588_v51 = vpop.permute.xlu0 %1587 }
0x1579   :  { %v1630_v44 = vmul.f32 %v3137_v31, %v2850_v1  ;;  %v1590_v55 = vmul.f32 %v1588_v51, %v1585_v48 }
0x157b   :  { %v1636_v42 = vadd.f32 %v1634_v28, %v1630_v44  ;;  %v1592_v32 = vadd.f32 %v1591_v52, %v1590_v55 }
0x157d   :  { %v1627_v7 = vmul.f32 %v1592_v32, %v2843_v39  ;;  %1638 = vrot.lane.b32.xlu1 %v1636_v42, %s2388_s17  ;;  %v1897_v42 = vld [vmem:[%s3335_s4 + $0x30] sm:$0xff] }
0x157f   :  { %v3146_v41 = vadd.f32 %v1628_v58, %v1627_v7  ;;  %v1894_v7 = vld [vmem:[%s3335_s4 + $0x18] sm:$0xff]  ;;  %v1893_v58 = vld [vmem:[%s3335_s4 + $0x10] sm:$0xff] }
0x1581   :  { %1642 = vrot.lane.b32.xlu0 %v3146_v41, %s2387_s16  ;;  %v1787_v55 = vmul.f32 %v3146_v41, %v2783_v36  ;;  %v1895_v36 = vld [vmem:[%s3335_s4 + $0x20] sm:$0xff] }
0x15ef   :  { %v1639_v30 = vpop.permute.xlu1 %1638 }
0x15f0   :  { %1644 = vrot.lane.b32.xlu1 %v1639_v30, %s2387_s16 }
0x15f3   :  { %v1643_v13 = vpop.permute.xlu0 %1642 }
0x15f4   :  { %2132 = vmatmul.mubr.msk.f32.vlgmr.msra.gmra.mxu1 %vm450_vm9, %v1643_v13 }
0x15f5   :  { %1719 = vmatprep.mubr.f32.mxu1 %v3339_v14 }
0x1662   :  { %v3153_v61 = vpop.permute.xlu1 %1644 }
0x1663   :  { %2133 = vmatmul.mubr.msk.f32.gmra.mxu1 %vm450_vm9, %v3153_v61 }
0x16b4   :  { %v1716_v29 = vpop.f32.mrf.mxu1 }
0x16b5   :  { %v1717_v10 = vadd.f32 %v1716_v29, %v2696_v62 }
0x16b6   :  { %v1718_v5 = vpop.f32.mrf.mxu1 }
0x16b7   :  { %1734 = vrot.lane.b32.xlu1 %v1717_v10, %s2386_s11  ;;  %v1726_v43 = vadd.f32 %v1717_v10, %v2770_v3 }
0x16b9   :  { %v2134_v12 = vmul.f32 -1.442695, %v1726_v43 }
0x16bb   :  { %2357 = vpow2.f32 %v2134_v12 }
0x16c8   :  { %v2358_v4 = vpop.eup %2357 }
0x16c9   :  { %v1730_v57 = vadd.f32 1.0, %v2358_v4 }
0x16cb   :  { %2359 = vrcp.f32 %v1730_v57 }
0x16d8   :  { %v2360_v15 = vpop.eup %2359 }
0x1723   :  { %v1721_v17 = vpop.f32.mrf.mxu1 }
0x1724   :  { %v1722_v59 = vadd.f32 %v1721_v17, %v2696_v62 }
0x1725   :  { %v1723_v18 = vpop.f32.mrf.mxu1 }
0x1726   :  { %v3161_v6 = vadd.f32 %v1723_v18, %v2714_v25  ;;  %v1752_v20 = vadd.f32 %v1722_v59, %v2733_v45 }
0x1728   :  { %1767 = vrot.lane.b32.xlu0 %v3161_v6, %s2386_s11  ;;  %v2135_v50 = vmul.f32 -1.442695, %v1752_v20  ;;  %v1759_v13 = vadd.f32 %v3161_v6, %v2743_v53 }
0x1729   :  { %v1735_v54 = vpop.permute.xlu1 %1734 }
0x172a   :  { %v1737_v19 = vmul.f32 %v2360_v15, %v1735_v54  ;;  %2361 = vpow2.f32 %v2135_v50  ;;  %v2136_v29 = vmul.f32 -1.442695, %v1759_v13 }
0x172c   :  { %1739 = vrot.lane.b32.xlu1 %v1737_v19, %s2386_s11 }
0x1737   :  { %v2362_v11 = vpop.eup %2361 }
0x1738   :  { %v1756_v56 = vadd.f32 1.0, %v2362_v11 }
0x173a   :  { %2363 = vrcp.f32 %v1756_v56 }
0x1747   :  { %v2364_v27 = vpop.eup %2363 }
0x179a   :  { %v1768_v25 = vpop.permute.xlu0 %1767 }
0x179b   :  { %v1770_v46 = vmul.f32 %v2364_v27, %v1768_v25 }
0x179d   :  { %1772 = vrot.lane.b32.xlu0 %v1770_v46, %s2386_s11 }
0x179e   :  { %v1740_v0 = vpop.permute.xlu1 %1739 }
0x179f   :  { %v1742_v48 = vadd.f32 %v1740_v0, %v2770_v3 }
0x17a1   :  { %2365 = vtanh.f32 %v1742_v48 }
0x17ae   :  { %v2366_v51 = vpop.eup %2365 }
0x17af   :  { %1746 = vrot.lane.b32.xlu1 %v2366_v51, %s2387_s16 }
0x17b3   :  { %1801 = vrot.lane.b32.xlu1 %v2795_v2, %s2387_s16  ;;  %v1744_v2 = vsub.f32 1.0, %v2360_v15 }
0x17b7   :  { %1810 = vrot.lane.b32.xlu1 %v2855_v49, %s2387_s16 }
0x17bb   :  { %1819 = vrot.lane.b32.xlu1 %v2914_v33, %s2387_s16  ;;  %v1790_v33 = vmul.f32 %v1639_v30, %v2797_v9  ;;  %v1898_v9 = vld [vmem:[%s3335_s4 + $0x38] sm:$0xff]  ;;  %v1891_v30 = vld [vmem:[%s3335_s4] sm:$0xff] }
0x17bc   :  { %2165 = vmatpush3.msra.mxu0 %v1898_v9 }
0x17bd   :  { %2166 = vmatprep.subr.mxu0 %v3339_v14 }
0x17be   :  { %2167 = vmatpush3.msra.mxu0 %v1897_v42 }
0x17bf   :  { %1828 = vrot.lane.b32.xlu1 %v3011_v37, %s2387_s16  ;;  %v1750_v37 = vmul.f32 %v2360_v15, %v3146_v41  ;;  %2168 = vmatprep.subr.mxu0 %v3339_v14  ;;  %v1892_v41 = vld [vmem:[%s3335_s4 + $0x8] sm:$0xff] }
0x17c3   :  { %1837 = vrot.lane.b32.xlu1 %v3053_v26, %s2387_s16 }
0x17c7   :  { %1846 = vrot.lane.b32.xlu1 %v3098_v23, %s2387_s16  ;;  %v428_v23 = vld [vmem:[%s3334_s1 + $0x40] sm:$0xff] }
0x17cb   :  { %1855 = vrot.lane.b32.xlu1 %v1592_v32, %s2387_s16  ;;  %v1896_v32 = vld [vmem:[%s3335_s4 + $0x28] sm:$0xff] }
0x17cc   :  { %2169 = vmatpush3.msra.mxu0 %v1896_v32 }
0x17cd   :  { %2170 = vmatprep.subr.mxu0 %v3339_v14 }
0x17ce   :  { %2171 = vmatpush3.msra.mxu0 %v1895_v36 }
0x17cf   :  { %2172 = vmatprep.subr.mxu0 %v3339_v14 }
0x17d0   :  { %2173 = vmatpush3.msra.mxu0 %v1894_v7 }
0x17d1   :  { %2174 = vmatprep.subr.mxu0 %v3339_v14 }
0x17d2   :  { %2175 = vmatpush3.msra.mxu0 %v1893_v58 }
0x17d3   :  { %2176 = vmatprep.subr.mxu0 %v3339_v14 }
0x17d4   :  { %2177 = vmatpush3.msra.mxu0 %v1892_v41 }
0x17d5   :  { %2178 = vmatprep.subr.mxu0 %v3339_v14 }
0x17d6   :  { %2179 = vmatpush3.msra.mxu0 %v1891_v30 }
0x180f   :  { %v1773_v62 = vpop.permute.xlu0 %1772 }
0x1810   :  { %v1775_v45 = vadd.f32 %v1773_v62, %v2743_v53 }
0x1812   :  { %2367 = vtanh.f32 %v1775_v45 }
0x1813   :  { %2369 = vpow2.f32 %v2136_v29 }
0x181f   :  { %v2368_v3 = vpop.eup %2367 }
0x1820   :  { %1779 = vrot.lane.b32.xlu0 %v2368_v3, %s2387_s16  ;;  %v2370_v10 = vpop.eup %2369 }
0x1821   :  { %v1747_v49 = vpop.permute.xlu1 %1746  ;;  %v1763_v5 = vadd.f32 1.0, %v2370_v10 }
0x1822   :  { %v1749_v44 = vmul.f32 %v1747_v49, %v1744_v2 }
0x1823   :  { %2371 = vrcp.f32 %v1763_v5 }
0x1824   :  { %v1751_v26 = vadd.f32 %v1750_v37, %v1749_v44  ;;  %1792 = vrot.lane.b32.xlu0 %v1790_v33, %s2387_s16 }
0x1826   :  { %1864 = vrot.lane.b32.xlu1 %v1751_v26, %s2387_s16  ;;  %v1786_v52 = vmul.f32 %v1751_v26, %v2781_v35 }
0x1828   :  { %v1788_v28 = vadd.f32 %v1787_v55, %v1786_v52 }
0x182a   :  { %1879 = vperm.xlu1 %2244, %v428_v23   ;;  %v2137_v23 = vld [vmem:[%s3335_s4 + $0x40] ss:$0 sm:$0xff] }
0x182e   :  { %1873 = vrot.lane.b32.xlu1 %v1788_v28, %s2387_s16 }
0x1830   :  { %v2372_v43 = vpop.eup %2371 }
0x1831   :  { %v1777_v12 = vsub.f32 1.0, %v2372_v43  ;;  %v1784_v57 = vmul.f32 %v2372_v43, %v3153_v61 }
0x1892   :  { %v1780_v4 = vpop.permute.xlu0 %1779 }
0x1893   :  { %v1782_v17 = vmul.f32 %v1780_v4, %v1777_v12 }
0x1895   :  { %v1785_v18 = vadd.f32 %v1784_v57, %v1782_v17 }
0x1897   :  { %1805 = vrot.lane.b32.xlu0 %v1785_v18, %s2388_s17  ;;  %v1789_v53 = vmul.f32 %v1785_v18, %v2785_v38 }
0x189b   :  { %1814 = vrot.lane.b32.xlu0 %v3137_v31, %s2388_s17  ;;  %v1793_v31 = vpop.permute.xlu0 %1792 }
0x189c   :  { %v1795_v61 = vadd.f32 %v1793_v31, %v1789_v53 }
0x189f   :  { %1823 = vrot.lane.b32.xlu0 %v3093_v34, %s2388_s17  ;;  %v1802_v34 = vpop.permute.xlu1 %1801 }
0x18a3   :  { %1832 = vrot.lane.b32.xlu0 %v3048_v16, %s2388_s17  ;;  %v1811_v16 = vpop.permute.xlu1 %1810 }
0x18a7   :  { %1841 = vrot.lane.b32.xlu0 %v3003_v8, %s2388_s17  ;;  %v1820_v6 = vpop.permute.xlu1 %1819 }
0x18ab   :  { %1850 = vrot.lane.b32.xlu0 %v2904_v22, %s2388_s17  ;;  %v1829_v15 = vpop.permute.xlu1 %1828 }
0x18af   :  { %1859 = vrot.lane.b32.xlu0 %v2845_v40, %s2388_s17 }
0x18b3   :  { %1868 = vrot.lane.b32.xlu0 %v2787_v47, %s2388_s17  ;;  %v1838_v47 = vpop.permute.xlu1 %1837 }
0x18b7   :  { %1797 = vrot.lane.b32.xlu0 %v1795_v61, %s2388_s17  ;;  %v1847_v11 = vpop.permute.xlu1 %1846 }
0x1909   :  { %v1806_v8 = vpop.permute.xlu0 %1805 }
0x190a   :  { %v1808_v54 = vsel %vm450_vm9, %v1802_v34, %v1806_v8 }
0x190b   :  { %v1882_v22 = vmul.f32 %v1808_v54, %v2785_v38 }
0x190d   :  { %v1815_v40 = vpop.permute.xlu0 %1814  ;;  %2181 = vmatmul.mubr.msk.f32.vlgmr.msra.gmra.mxu0 %vm1904_vm5, %v1882_v22 }
0x190e   :  { %v1817_v19 = vsel %vm450_vm9, %v1811_v16, %v1815_v40  ;;  %2183 = vmatprep.mubr.msk.f32.mxu0 %vm2389_vm4, %v3339_v14 }
0x190f   :  { %v1883_v59 = vmul.f32 %v1817_v19, %v2850_v1 }
0x1911   :  { %v1824_v20 = vpop.permute.xlu0 %1823  ;;  %2184 = vmatmul.mubr.msk.f32.gmra.mxu0 %vm1904_vm5, %v1883_v59 }
0x1912   :  { %v1826_v50 = vsel %vm450_vm9, %v1820_v6, %v1824_v20  ;;  %2186 = vmatprep.mubr.msk.f32.mxu0 %vm2389_vm4, %v3339_v14 }
0x1913   :  { %v1884_v38 = vmul.f32 %v1826_v50, %v2909_v63  ;;  %v1856_v63 = vpop.permute.xlu1 %1855 }
0x1915   :  { %v1833_v56 = vpop.permute.xlu0 %1832  ;;  %2187 = vmatmul.mubr.msk.f32.gmra.mxu0 %vm1904_vm5, %v1884_v38 }
0x1916   :  { %v1835_v27 = vsel %vm450_vm9, %v1829_v15, %v1833_v56  ;;  %2189 = vmatprep.mubr.msk.f32.mxu0 %vm2389_vm4, %v3339_v14 }
0x1917   :  { %v1885_v1 = vmul.f32 %v1835_v27, %v3008_v60  ;;  %v1865_v60 = vpop.permute.xlu1 %1864 }
0x1919   :  { %v1842_v25 = vpop.permute.xlu0 %1841  ;;  %2190 = vmatmul.mubr.msk.f32.gmra.mxu0 %vm1904_vm5, %v1885_v1 }
0x191a   :  { %v1844_v46 = vsel %vm450_vm9, %v1838_v47, %v1842_v25  ;;  %2192 = vmatprep.mubr.msk.f32.mxu0 %vm2389_vm4, %v3339_v14 }
0x191b   :  { %v1886_v0 = vmul.f32 %v1844_v46, %v3001_v24  ;;  %v1880_v24 = vpop.permute.xlu1 %1879 }
0x191d   :  { %v1851_v48 = vpop.permute.xlu0 %1850  ;;  %2193 = vmatmul.mubr.msk.f32.gmra.mxu0 %vm1904_vm5, %v1886_v0 }
0x191e   :  { %v1853_v51 = vsel %vm450_vm9, %v1847_v11, %v1851_v48  ;;  %2195 = vmatprep.mubr.msk.f32.mxu0 %vm2389_vm4, %v3339_v14 }
0x191f   :  { %v1887_v62 = vmul.f32 %v1853_v51, %v2902_v21  ;;  %v1874_v37 = vpop.permute.xlu1 %1873 }
0x1921   :  { %v1860_v45 = vpop.permute.xlu0 %1859  ;;  %2196 = vmatmul.mubr.msk.f32.gmra.mxu0 %vm1904_vm5, %v1887_v62 }
0x1922   :  { %v1862_v3 = vsel %vm450_vm9, %v1856_v63, %v1860_v45  ;;  %2198 = vmatprep.mubr.msk.f32.mxu0 %vm2389_vm4, %v3339_v14 }
0x1923   :  { %v1888_v2 = vmul.f32 %v1862_v3, %v2843_v39 }
0x1925   :  { %v1869_v49 = vpop.permute.xlu0 %1868  ;;  %2199 = vmatmul.mubr.msk.f32.gmra.mxu0 %vm1904_vm5, %v1888_v2 }
0x1926   :  { %v1871_v33 = vsel %vm450_vm9, %v1865_v60, %v1869_v49  ;;  %2201 = vmatprep.mubr.msk.f32.mxu0 %vm2389_vm4, %v3339_v14 }
0x1927   :  { %v1889_v21 = vmul.f32 %v1871_v33, %v2781_v35 }
0x1929   :  { %v1798_v44 = vpop.permute.xlu0 %1797  ;;  %2202 = vmatmul.mubr.msk.f32.gmra.mxu0 %vm1904_vm5, %v1889_v21 }
0x192a   :  { %v1876_v26 = vsel %vm450_vm9, %v1874_v37, %v1798_v44  ;;  %2204 = vmatprep.mubr.msk.f32.mxu0 %vm2389_vm4, %v3339_v14 }
0x192b   :  { %v1890_v39 = vmul.f32 %v1880_v24, %v1876_v26 }
0x192d   :  { %2205 = vmatmul.mubr.msk.f32.gmra.mxu0 %vm1904_vm5, %v1890_v39 }
0x19cd   :  { %v1998_v52 = vpop.f32.mrf.mxu0 }
0x19ce   :  { %v1999_v55 = vadd.f32 %v2137_v23, %v1998_v52 }
0x19cf   :  { %v2182_v28 = vpop.f32.mrf.mxu0 }
0x19d0   :  { %2042 = vst.msk [vmem:[%s3336_s5] sm:$0xff] %vm450_vm9, %v1999_v55 }
0x19d1   :  { %v2003_v35 = vpop.f32.mrf.mxu0 }
0x19d2   :  { %v2004_v9 = vadd.f32 %v2137_v23, %v2003_v35 }
0x19d3   :  { %v2185_v42 = vpop.f32.mrf.mxu0 }
0x19d4   :  { %2043 = vst.msk [vmem:[%s3336_s5 + $0x8] sm:$0xff] %vm450_vm9, %v2004_v9 }
0x19d5   :  { %v2008_v14 = vpop.f32.mrf.mxu0 }
0x19d6   :  { %v2009_v32 = vadd.f32 %v2137_v23, %v2008_v14 }
0x19d7   :  { %v2188_v36 = vpop.f32.mrf.mxu0 }
0x19d8   :  { %2044 = vst.msk [vmem:[%s3336_s5 + $0x10] sm:$0xff] %vm450_vm9, %v2009_v32 }
0x19d9   :  { %v2013_v7 = vpop.f32.mrf.mxu0 }
0x19da   :  { %v2014_v58 = vadd.f32 %v2137_v23, %v2013_v7 }
0x19db   :  { %v2191_v41 = vpop.f32.mrf.mxu0 }
0x19dc   :  { %2045 = vst.msk [vmem:[%s3336_s5 + $0x18] sm:$0xff] %vm450_vm9, %v2014_v58 }
0x19dd   :  { %v2018_v30 = vpop.f32.mrf.mxu0 }
0x19de   :  { %v2019_v13 = vadd.f32 %v2137_v23, %v2018_v30 }
0x19df   :  { %v2194_v29 = vpop.f32.mrf.mxu0 }
0x19e0   :  { %2046 = vst.msk [vmem:[%s3336_s5 + $0x20] sm:$0xff] %vm450_vm9, %v2019_v13 }
0x19e1   :  { %v2023_v10 = vpop.f32.mrf.mxu0 }
0x19e2   :  { %v2024_v5 = vadd.f32 %v2137_v23, %v2023_v10 }
0x19e3   :  { %v2197_v43 = vpop.f32.mrf.mxu0 }
0x19e4   :  { %2047 = vst.msk [vmem:[%s3336_s5 + $0x28] sm:$0xff] %vm450_vm9, %v2024_v5 }
0x19e5   :  { %v2028_v12 = vpop.f32.mrf.mxu0 }
0x19e6   :  { %v2029_v4 = vadd.f32 %v2137_v23, %v2028_v12 }
0x19e7   :  { %v2200_v57 = vpop.f32.mrf.mxu0 }
0x19e8   :  { %2048 = vst.msk [vmem:[%s3336_s5 + $0x30] sm:$0xff] %vm450_vm9, %v2029_v4 }
0x19e9   :  { %v2033_v17 = vpop.f32.mrf.mxu0 }
0x19ea   :  { %v2034_v18 = vadd.f32 %v2137_v23, %v2033_v17 }
0x19eb   :  { %v2203_v53 = vpop.f32.mrf.mxu0 }
0x19ec   :  { %2049 = vst.msk [vmem:[%s3336_s5 + $0x38] sm:$0xff] %vm450_vm9, %v2034_v18 }
0x19ed   :  { %v2038_v31 = vpop.f32.mrf.mxu0 }
0x19ee   :  { %v2039_v61 = vadd.f32 %v2137_v23, %v2038_v31 }
0x19ef   :  { %v2206_v34 = vpop.f32.mrf.mxu0 }
0x19f0   :  { %2050 = vst.msk [vmem:[%s3336_s5 + $0x40] sm:$0xff] %vm450_vm9, %v2039_v61 }

</bundles_post_ra>
